<compile_context>
chip_gen: v7x
topology: tpu7x:2x2x1
jax: 0.10.0
libtpu: 0.0.40
codegen_flags: <defaults>
</compile_context>

<pallas_src>
import jax
import jax.numpy as jnp
from jax.experimental import pallas as pl
from jax.experimental.pallas import tpu as pltpu


def _attention_kernel(num_heads, head_dim, kv_tiles, compute_dtype):
    H, d = num_heads, head_dim
    C = H * d

    def kernel(x_ref, wqkv_ref, wproj_ref, bproj_ref, o_ref):
        # x_ref:     (Bt, N, C)   batch tile of activations, compute_dtype
        # wqkv_ref:  (C, 3C)      pre-transposed qkv weight (q-scale folded), compute_dtype
        # wproj_ref: (C, C)       pre-transposed proj weight, compute_dtype
        # bproj_ref: (1, C)       proj bias, f32
        # o_ref:     (Bt, N, C)   caller dtype
        Bt, N, _ = x_ref.shape
        R = Bt * N
        BH = Bt * H

        # Lane-dense (R, C) slab: Bt*N rows per MXU pass for both projections.
        x = x_ref[...].reshape(R, C)

        # Fused QKV projection, f32 accumulation, cast down immediately.
        qkv = jnp.dot(x, wqkv_ref[...],
                      preferred_element_type=jnp.float32).astype(compute_dtype)  # (R, 3C)

        def split_heads(t):  # (R, C) -> (Bt*H, N, d); one bf16 relayout pass each
            return t.reshape(Bt, N, H, d).transpose(0, 2, 1, 3).reshape(BH, N, d)

        q = split_heads(qkv[:, :C])           # q-scale already folded into Wqkv
        k = split_heads(qkv[:, C:2 * C])
        v = split_heads(qkv[:, 2 * C:])

        def tile_scores(start, size):
            k_t = k[:, start:start + size, :]                     # static slices
            v_t = v[:, start:start + size, :]
            s = jnp.einsum('bqd,bkd->bqk', q, k_t,
                           preferred_element_type=jnp.float32)    # (BH, N, size) f32
            return s, v_t

        # ---- online softmax over KV tiles (flash-style, unnormalized accumulation) ----
        start0, size0 = kv_tiles[0]
        s, v_t = tile_scores(start0, size0)
        m = jnp.max(s, axis=-1, keepdims=True)                    # (BH, N, 1) f32
        e = jnp.exp(s - m)
        l = jnp.sum(e, axis=-1, keepdims=True)
        acc = jnp.einsum('bqk,bkd->bqd', e.astype(compute_dtype), v_t,
                         preferred_element_type=jnp.float32)      # (BH, N, d) f32

        for start, size in kv_tiles[1:]:
            s, v_t = tile_scores(start, size)
            m_new = jnp.maximum(m, jnp.max(s, axis=-1, keepdims=True))
            alpha = jnp.exp(m - m_new)
            e = jnp.exp(s - m_new)
            l = alpha * l + jnp.sum(e, axis=-1, keepdims=True)
            acc = alpha * acc + jnp.einsum('bqk,bkd->bqd', e.astype(compute_dtype), v_t,
                                           preferred_element_type=jnp.float32)
            m = m_new

        # Normalize AFTER the PV matmuls: N*d (not N*N) multiplies per (batch, head).
        # attn_drop(p=0.0) is identity.
        ctx = acc * pl.reciprocal(l, approx=True)                 # (BH, N, d) f32

        # Merge heads back to (R, C) with a single relayout.
        out = (ctx.reshape(Bt, H, N, d).transpose(0, 2, 1, 3)
                  .reshape(R, C).astype(compute_dtype))

        # Output projection + bias, f32 accumulation.  proj_drop(p=0.0) is identity.
        y = jnp.dot(out, wproj_ref[...],
                    preferred_element_type=jnp.float32) + bproj_ref[...]
        o_ref[...] = y.reshape(Bt, N, C).astype(o_ref.dtype)

    return kernel


def _pick_batch_tile(B, N, target_rows):
    """Pack batch elements so the MXU sees >= target_rows rows, but keep >=2 grid steps."""
    bt = max(1, -(-target_rows // N))        # ceil(target_rows / N)
    bt = min(bt, B)
    if B >= 2:
        bt = min(bt, -(-B // 2))             # >=2 grid steps: v7x has 2 TensorCores
    return bt


def _vmem_estimate_bytes(Bt, N, C, H, kv_tile, in_bytes, out_bytes, cd_bytes):
    """Rough per-grid-step VMEM working set."""
    R = Bt * N
    d = C // H
    BH = Bt * H
    est = 0
    est += 2 * R * C * in_bytes                       # x block (double-buffered)
    est += 2 * R * C * out_bytes                      # out block (double-buffered)
    est += (3 * C * C + C * C) * cd_bytes + C * 4     # weights + bias (single-buffered)
    est += R * 3 * C * cd_bytes                       # qkv (compute dtype)
    est += 3 * R * C * cd_bytes                       # q, k, v head-split copies
    est += 2 * BH * N * kv_tile * 4                   # per-tile scores + exp (f32)
    est += BH * N * kv_tile * cd_bytes                # exp cast for PV matmul
    est += BH * N * d * 4                             # flash accumulator (f32)
    est += 2 * R * C * 4 + R * C * cd_bytes           # ctx / merged / proj intermediates
    return est


def attention_forward(x, wqkv, wproj, bproj, *, num_heads,
                      compute_dtype=jnp.bfloat16, batch_tile=None, kv_tile=None):
    """x: (B, N, C); wqkv: (3C, C) torch layout; wproj: (C, C) torch layout; bproj: (C,)."""
    B, N, C = x.shape
    head_dim = C // num_heads
    scale = head_dim ** (-0.5)
    out_dtype = x.dtype

    # Fold the q-scale into the first C output rows of the torch-layout (3C, C) weight,
    # pre-transpose, and ship weights in compute_dtype.
    wqkv_scaled = wqkv.at[:C, :].multiply(scale)
    wqkv_t = jnp.transpose(wqkv_scaled).astype(compute_dtype)    # (C, 3C)
    wproj_t = jnp.transpose(wproj).astype(compute_dtype)         # (C, C)
    bproj_2d = bproj.reshape(1, C).astype(jnp.float32)           # (1, C)

    # Stream activations at compute precision (halves HBM read + x VMEM block).
    x_c = x.astype(compute_dtype)

    # ---- per-generation VMEM budget --------------------------------------------------
    try:
        vmem_cap = pltpu.get_tpu_info().vmem_capacity_bytes
    except Exception:
        vmem_cap = 64 * 1024 * 1024                  # conservative (v7x-sized) fallback
    budget = int(0.78 * vmem_cap)                    # ~50 MiB on v7x, ~100 MiB on v5e/v6e
    target_rows = 512 if vmem_cap >= 100 * 1024 * 1024 else 256

    Bt = batch_tile if batch_tile is not None else _pick_batch_tile(B, N, target_rows)
    tk = kv_tile if kv_tile is not None else min(N, 512)

    in_b = jnp.dtype(compute_dtype).itemsize
    out_b = jnp.dtype(out_dtype).itemsize
    while (_vmem_estimate_bytes(Bt, N, C, num_heads, tk, in_b, out_b, in_b) > budget
           and (Bt > 1 or tk > 128)):
        if Bt > 1:
            Bt //= 2
        else:
            tk = max(128, tk // 2)
    est = _vmem_estimate_bytes(Bt, N, C, num_heads, tk, in_b, out_b, in_b)
    vmem_limit = int(min(budget, est * 1.3)) if est * 1.3 > 12 * 1024 * 1024 else None

    # Static KV tiles (tail tile gets a smaller static size; no masking needed).
    kv_tiles = tuple((s, min(tk, N - s)) for s in range(0, N, tk))

    # Pad the batch instead of collapsing Bt for awkward B.
    Bpad = -(-B // Bt) * Bt
    x_p = x_c if Bpad == B else jnp.pad(x_c, ((0, Bpad - B), (0, 0), (0, 0)))
    grid = Bpad // Bt

    kernel = _attention_kernel(num_heads, head_dim, kv_tiles, compute_dtype)

    def _run(weight_pipeline_mode):
        wkw = {} if weight_pipeline_mode is None else {"pipeline_mode": weight_pipeline_mode}
        in_specs = [
            pl.BlockSpec((Bt, N, C), lambda b: (b, 0, 0)),          # x (batch-tiled)
            pl.BlockSpec((C, 3 * C), lambda b: (0, 0), **wkw),      # Wqkv^T (scaled)
            pl.BlockSpec((C, C), lambda b: (0, 0), **wkw),          # Wproj^T
            pl.BlockSpec((1, C), lambda b: (0, 0), **wkw),          # b_proj
        ]
        return pl.pallas_call(
            kernel,
            out_shape=jax.ShapeDtypeStruct((Bpad, N, C), out_dtype),
            grid_spec=pltpu.PrefetchScalarGridSpec(
                num_scalar_prefetch=0,
                grid=(grid,),
                in_specs=in_specs,
                out_specs=pl.BlockSpec((Bt, N, C), lambda b: (b, 0, 0)),
            ),
            compiler_params=pltpu.CompilerParams(
                dimension_semantics=("parallel",),
                vmem_limit_bytes=vmem_limit),
        )(x_p, wqkv_t, wproj_t, bproj_2d)

    try:
        # Grid-invariant weights: single-buffered (halves their VMEM footprint).
        y = _run(pl.Buffered(1))
    except Exception:
        # TODO(synk): pipeline_mode=pl.Buffered(1) rejected by this jax version; default buffering.
        y = _run(None)

    return y[:B] if Bpad != B else y


def attention_reference(x, wqkv, wproj, bproj, *, num_heads):
    """Pure-JAX f32 reference matching the PyTorch forward exactly."""
    B, N, C = x.shape
    head_dim = C // num_heads
    scale = head_dim ** (-0.5)
    qkv = x @ wqkv.T                                    # (B, N, 3C)
    qkv = qkv.reshape(B, N, 3, num_heads, head_dim).transpose(2, 0, 3, 1, 4)
    q, k, v = qkv[0], qkv[1], qkv[2]                    # (B, H, N, d)
    q = q * scale
    attn = q @ jnp.swapaxes(k, -2, -1)                  # (B, H, N, N)
    attn = jax.nn.softmax(attn, axis=-1)
    out = (attn @ v).transpose(0, 2, 1, 3).reshape(B, N, -1)
    return out @ wproj.T + bproj


if __name__ == "__main__":
    # Small shapes consistent with the module: B=2, N=8 (seq), C=32 (dim), 8 heads.
    B, N, C = 2, 8, 32
    num_heads = 8

    key = jax.random.PRNGKey(0)
    kx, kq, kp, kb = jax.random.split(key, 4)

    x = jax.random.normal(kx, (B, N, C), dtype=jnp.float32)
    # PyTorch Linear layout: (out_features, in_features).
    wqkv = jax.random.normal(kq, (3 * C, C), dtype=jnp.float32) * 0.05
    wproj = jax.random.normal(kp, (C, C), dtype=jnp.float32) * 0.05
    bproj = jax.random.normal(kb, (C,), dtype=jnp.float32) * 0.05

    y = attention_forward(x, wqkv, wproj, bproj, num_heads=num_heads)
    y = jax.block_until_ready(y)

    y_ref = attention_reference(x, wqkv, wproj, bproj, num_heads=num_heads)
    assert y.shape == (B, N, C)
    # bf16 MXU inputs with f32 accumulation + approx softmax reciprocal: relaxed tolerance.
    assert jnp.allclose(y, y_ref, atol=2e-2, rtol=2e-2), "mismatch vs reference"

    print("KERNEL_OK")
</pallas_src>

<mosaic_0001>
module attributes {stable_mosaic.version = 11 : i64} {
  func.func @kernel(%arg0: i32, %arg1: memref<1x8x32xbf16, #tpu.memory_space<vmem>>, %arg2: memref<32x96xbf16, #tpu.memory_space<vmem>>, %arg3: memref<32x32xbf16, #tpu.memory_space<vmem>>, %arg4: memref<1x32xf32, #tpu.memory_space<vmem>>, %arg5: memref<1x8x32xf32, #tpu.memory_space<vmem>>) attributes {dimension_semantics = [#tpu.dimension_semantics<parallel>], iteration_bounds = array<i64: 2>, scalar_prefetch = 0 : i64, scratch_operands = 0 : i64, tpu.core_type = #tpu.core_type<tc>, window_params = [{transform_indices = @transform_0, window_bounds = array<i64: 1, 8, 32>}, {pipeline_mode = #tpu.pipeline_mode<synchronous>, transform_indices = @transform_1, window_bounds = array<i64: 32, 96>}, {pipeline_mode = #tpu.pipeline_mode<synchronous>, transform_indices = @transform_2, window_bounds = array<i64: 32, 32>}, {pipeline_mode = #tpu.pipeline_mode<synchronous>, transform_indices = @transform_3, window_bounds = array<i64: 1, 32>}, {transform_indices = @transform_4, window_bounds = array<i64: 1, 8, 32>}]} {
    %c0 = arith.constant 0 : index
    %c0_0 = arith.constant 0 : index
    %c0_1 = arith.constant 0 : index
    %0 = vector.load %arg1[%c0, %c0_0, %c0_1] : memref<1x8x32xbf16, #tpu.memory_space<vmem>>, vector<1x8x32xbf16>
    %1 = vector.shape_cast %0 : vector<1x8x32xbf16> to vector<8x32xbf16>
    %c0_2 = arith.constant 0 : index
    %c0_3 = arith.constant 0 : index
    %2 = vector.load %arg2[%c0_2, %c0_3] : memref<32x96xbf16, #tpu.memory_space<vmem>>, vector<32x96xbf16>
    %cst = arith.constant dense<0.000000e+00> : vector<8x96xf32>
    %3 = tpu.matmul %1, %2, %cst {dimension_numbers = #tpu.dot_dimension_numbers<[1], [0], [0], [1], [0, 0, 1, 1], [], []>} : vector<8x32xbf16>, vector<32x96xbf16>, vector<8x96xf32> -> vector<8x96xf32>
    %4 = arith.truncf %3 : vector<8x96xf32> to vector<8x96xbf16>
    %5 = vector.extract_strided_slice %4 {offsets = [0, 0], sizes = [8, 32], strides = [1, 1]} : vector<8x96xbf16> to vector<8x32xbf16>
    %6 = vector.shape_cast %5 : vector<8x32xbf16> to vector<1x8x8x4xbf16>
    %7 = tpu.transpose %6, [0, 2, 1, 3] : vector<1x8x8x4xbf16> -> vector<1x8x8x4xbf16>
    %8 = vector.shape_cast %7 : vector<1x8x8x4xbf16> to vector<8x8x4xbf16>
    %9 = vector.extract_strided_slice %4 {offsets = [0, 32], sizes = [8, 32], strides = [1, 1]} : vector<8x96xbf16> to vector<8x32xbf16>
    %10 = vector.shape_cast %9 : vector<8x32xbf16> to vector<1x8x8x4xbf16>
    %11 = tpu.transpose %10, [0, 2, 1, 3] : vector<1x8x8x4xbf16> -> vector<1x8x8x4xbf16>
    %12 = vector.shape_cast %11 : vector<1x8x8x4xbf16> to vector<8x8x4xbf16>
    %13 = vector.extract_strided_slice %4 {offsets = [0, 64], sizes = [8, 32], strides = [1, 1]} : vector<8x96xbf16> to vector<8x32xbf16>
    %14 = vector.shape_cast %13 : vector<8x32xbf16> to vector<1x8x8x4xbf16>
    %15 = tpu.transpose %14, [0, 2, 1, 3] : vector<1x8x8x4xbf16> -> vector<1x8x8x4xbf16>
    %16 = vector.shape_cast %15 : vector<1x8x8x4xbf16> to vector<8x8x4xbf16>
    "tpu.trace_start"() <{level = 10 : i32, message = "bqd,bkd->bqk"}> : () -> ()
    %cst_4 = arith.constant dense<0.000000e+00> : vector<8x8x8xf32>
    %17 = tpu.matmul %8, %12, %cst_4 {dimension_numbers = #tpu.dot_dimension_numbers<[2], [2], [1], [1], [0, 0, 0, 1, 1, 1], [0], [0]>} : vector<8x8x4xbf16>, vector<8x8x4xbf16>, vector<8x8x8xf32> -> vector<8x8x8xf32>
    "tpu.trace_stop"() : () -> ()
    %cst_5 = arith.constant dense<0xFF800000> : vector<8x8xf32>
    %18 = vector.multi_reduction <maximumf>, %17, %cst_5 [2] : vector<8x8x8xf32> to vector<8x8xf32>
    %19 = vector.shape_cast %18 : vector<8x8xf32> to vector<8x8x1xf32>
    %20 = vector.broadcast %19 : vector<8x8x1xf32> to vector<8x8x8xf32>
    %21 = arith.subf %17, %20 : vector<8x8x8xf32>
    %22 = math.exp %21 : vector<8x8x8xf32>
    %cst_6 = arith.constant dense<0.000000e+00> : vector<8x8xf32>
    %23 = vector.multi_reduction <add>, %22, %cst_6 [2] : vector<8x8x8xf32> to vector<8x8xf32>
    %24 = vector.shape_cast %23 : vector<8x8xf32> to vector<8x8x1xf32>
    %25 = arith.truncf %22 : vector<8x8x8xf32> to vector<8x8x8xbf16>
    "tpu.trace_start"() <{level = 10 : i32, message = "bqk,bkd->bqd"}> : () -> ()
    %cst_7 = arith.constant dense<0.000000e+00> : vector<8x8x4xf32>
    %26 = tpu.matmul %25, %16, %cst_7 {dimension_numbers = #tpu.dot_dimension_numbers<[2], [1], [1], [2], [0, 0, 0, 1, 1, 2], [0], [0]>} : vector<8x8x8xbf16>, vector<8x8x4xbf16>, vector<8x8x4xf32> -> vector<8x8x4xf32>
    "tpu.trace_stop"() : () -> ()
    %27 = tpu.reciprocal %24 {approx = true} : vector<8x8x1xf32> -> vector<8x8x1xf32>
    %28 = vector.broadcast %27 : vector<8x8x1xf32> to vector<8x8x4xf32>
    %29 = arith.mulf %26, %28 : vector<8x8x4xf32>
    %30 = vector.shape_cast %29 : vector<8x8x4xf32> to vector<1x8x8x4xf32>
    %31 = tpu.transpose %30, [0, 2, 1, 3] : vector<1x8x8x4xf32> -> vector<1x8x8x4xf32>
    %32 = vector.shape_cast %31 : vector<1x8x8x4xf32> to vector<8x32xf32>
    %33 = arith.truncf %32 : vector<8x32xf32> to vector<8x32xbf16>
    %c0_8 = arith.constant 0 : index
    %c0_9 = arith.constant 0 : index
    %34 = vector.load %arg3[%c0_8, %c0_9] : memref<32x32xbf16, #tpu.memory_space<vmem>>, vector<32x32xbf16>
    %cst_10 = arith.constant dense<0.000000e+00> : vector<8x32xf32>
    %35 = tpu.matmul %33, %34, %cst_10 {dimension_numbers = #tpu.dot_dimension_numbers<[1], [0], [0], [1], [0, 0, 1, 1], [], []>} : vector<8x32xbf16>, vector<32x32xbf16>, vector<8x32xf32> -> vector<8x32xf32>
    %c0_11 = arith.constant 0 : index
    %c0_12 = arith.constant 0 : index
    %36 = vector.load %arg4[%c0_11, %c0_12] : memref<1x32xf32, #tpu.memory_space<vmem>>, vector<1x32xf32>
    %37 = vector.broadcast %36 : vector<1x32xf32> to vector<8x32xf32>
    %38 = arith.addf %35, %37 : vector<8x32xf32>
    %39 = vector.shape_cast %38 : vector<8x32xf32> to vector<1x8x32xf32>
    %c0_13 = arith.constant 0 : index
    %c0_14 = arith.constant 0 : index
    %c0_15 = arith.constant 0 : index
    %40 = vector.load %arg5[%c0_13, %c0_14, %c0_15] : memref<1x8x32xf32, #tpu.memory_space<vmem>>, vector<1x8x32xf32>
    tpu.vector_store %arg5[%c0_13, %c0_14, %c0_15], %39 {strides = array<i32>} : memref<1x8x32xf32, #tpu.memory_space<vmem>>, vector<1x8x32xf32>,
    return
  }
  func.func @transform_0(%arg0: i32) -> (i32, i32, i32) {
    %c0_i32 = arith.constant 0 : i32
    %c0_i32_0 = arith.constant 0 : i32
    %c0_i32_1 = arith.constant 0 : i32
    return %arg0, %c0_i32, %c0_i32_0 : i32, i32, i32
  }
  func.func @transform_1(%arg0: i32) -> (i32, i32) {
    %c0_i32 = arith.constant 0 : i32
    %c0_i32_0 = arith.constant 0 : i32
    %c0_i32_1 = arith.constant 0 : i32
    return %c0_i32, %c0_i32_0 : i32, i32
  }
  func.func @transform_2(%arg0: i32) -> (i32, i32) {
    %c0_i32 = arith.constant 0 : i32
    %c0_i32_0 = arith.constant 0 : i32
    %c0_i32_1 = arith.constant 0 : i32
    return %c0_i32, %c0_i32_0 : i32, i32
  }
  func.func @transform_3(%arg0: i32) -> (i32, i32) {
    %c0_i32 = arith.constant 0 : i32
    %c0_i32_0 = arith.constant 0 : i32
    %c0_i32_1 = arith.constant 0 : i32
    return %c0_i32, %c0_i32_0 : i32, i32
  }
  func.func @transform_4(%arg0: i32) -> (i32, i32, i32) {
    %c0_i32 = arith.constant 0 : i32
    %c0_i32_0 = arith.constant 0 : i32
    %c0_i32_1 = arith.constant 0 : i32
    return %arg0, %c0_i32, %c0_i32_0 : i32, i32, i32
  }
}

module attributes {stable_mosaic.version = 11 : i64} {
  func.func @kernel(%arg0: i32, %arg1: memref<1x8x32xbf16, #tpu.memory_space<vmem>>, %arg2: memref<32x96xbf16, #tpu.memory_space<vmem>>, %arg3: memref<32x32xbf16, #tpu.memory_space<vmem>>, %arg4: memref<1x32xf32, #tpu.memory_space<vmem>>, %arg5: memref<1x8x32xf32, #tpu.memory_space<vmem>>) attributes {dimension_semantics = [#tpu.dimension_semantics<parallel>], iteration_bounds = array<i64: 2>, scalar_prefetch = 0 : i64, scratch_operands = 0 : i64, tpu.core_type = #tpu.core_type<tc>, window_params = [{transform_indices = @transform_0, window_bounds = array<i64: 1, 8, 32>}, {pipeline_mode = #tpu.pipeline_mode<synchronous>, transform_indices = @transform_1, window_bounds = array<i64: 32, 96>}, {pipeline_mode = #tpu.pipeline_mode<synchronous>, transform_indices = @transform_2, window_bounds = array<i64: 32, 32>}, {pipeline_mode = #tpu.pipeline_mode<synchronous>, transform_indices = @transform_3, window_bounds = array<i64: 1, 32>}, {transform_indices = @transform_4, window_bounds = array<i64: 1, 8, 32>}]} {
    %c0 = arith.constant 0 : index
    %c0_0 = arith.constant 0 : index
    %c0_1 = arith.constant 0 : index
    %0 = vector.load %arg1[%c0, %c0_0, %c0_1] : memref<1x8x32xbf16, #tpu.memory_space<vmem>>, vector<1x8x32xbf16>
    %1 = vector.shape_cast %0 : vector<1x8x32xbf16> to vector<8x32xbf16>
    %c0_2 = arith.constant 0 : index
    %c0_3 = arith.constant 0 : index
    %2 = vector.load %arg2[%c0_2, %c0_3] : memref<32x96xbf16, #tpu.memory_space<vmem>>, vector<32x96xbf16>
    %cst = arith.constant dense<0.000000e+00> : vector<8x96xf32>
    %3 = tpu.matmul %1, %2, %cst {dimension_numbers = #tpu.dot_dimension_numbers<[1], [0], [0], [1], [0, 0, 1, 1], [], []>} : vector<8x32xbf16>, vector<32x96xbf16>, vector<8x96xf32> -> vector<8x96xf32>
    %4 = arith.truncf %3 : vector<8x96xf32> to vector<8x96xbf16>
    %5 = vector.extract_strided_slice %4 {offsets = [0, 0], sizes = [8, 32], strides = [1, 1]} : vector<8x96xbf16> to vector<8x32xbf16>
    %6 = vector.shape_cast %5 : vector<8x32xbf16> to vector<1x8x8x4xbf16>
    %7 = tpu.transpose %6, [0, 2, 1, 3] : vector<1x8x8x4xbf16> -> vector<1x8x8x4xbf16>
    %8 = vector.shape_cast %7 : vector<1x8x8x4xbf16> to vector<8x8x4xbf16>
    %9 = vector.extract_strided_slice %4 {offsets = [0, 32], sizes = [8, 32], strides = [1, 1]} : vector<8x96xbf16> to vector<8x32xbf16>
    %10 = vector.shape_cast %9 : vector<8x32xbf16> to vector<1x8x8x4xbf16>
    %11 = tpu.transpose %10, [0, 2, 1, 3] : vector<1x8x8x4xbf16> -> vector<1x8x8x4xbf16>
    %12 = vector.shape_cast %11 : vector<1x8x8x4xbf16> to vector<8x8x4xbf16>
    %13 = vector.extract_strided_slice %4 {offsets = [0, 64], sizes = [8, 32], strides = [1, 1]} : vector<8x96xbf16> to vector<8x32xbf16>
    %14 = vector.shape_cast %13 : vector<8x32xbf16> to vector<1x8x8x4xbf16>
    %15 = tpu.transpose %14, [0, 2, 1, 3] : vector<1x8x8x4xbf16> -> vector<1x8x8x4xbf16>
    %16 = vector.shape_cast %15 : vector<1x8x8x4xbf16> to vector<8x8x4xbf16>
    "tpu.trace_start"() <{level = 10 : i32, message = "bqd,bkd->bqk"}> : () -> ()
    %cst_4 = arith.constant dense<0.000000e+00> : vector<8x8x8xf32>
    %17 = tpu.matmul %8, %12, %cst_4 {dimension_numbers = #tpu.dot_dimension_numbers<[2], [2], [1], [1], [0, 0, 0, 1, 1, 1], [0], [0]>} : vector<8x8x4xbf16>, vector<8x8x4xbf16>, vector<8x8x8xf32> -> vector<8x8x8xf32>
    "tpu.trace_stop"() : () -> ()
    %cst_5 = arith.constant dense<0xFF800000> : vector<8x8xf32>
    %18 = vector.multi_reduction <maximumf>, %17, %cst_5 [2] : vector<8x8x8xf32> to vector<8x8xf32>
    %19 = vector.shape_cast %18 : vector<8x8xf32> to vector<8x8x1xf32>
    %20 = vector.broadcast %19 : vector<8x8x1xf32> to vector<8x8x8xf32>
    %21 = arith.subf %17, %20 : vector<8x8x8xf32>
    %22 = math.exp %21 : vector<8x8x8xf32>
    %cst_6 = arith.constant dense<0.000000e+00> : vector<8x8xf32>
    %23 = vector.multi_reduction <add>, %22, %cst_6 [2] : vector<8x8x8xf32> to vector<8x8xf32>
    %24 = vector.shape_cast %23 : vector<8x8xf32> to vector<8x8x1xf32>
    %25 = arith.truncf %22 : vector<8x8x8xf32> to vector<8x8x8xbf16>
    "tpu.trace_start"() <{level = 10 : i32, message = "bqk,bkd->bqd"}> : () -> ()
    %cst_7 = arith.constant dense<0.000000e+00> : vector<8x8x4xf32>
    %26 = tpu.matmul %25, %16, %cst_7 {dimension_numbers = #tpu.dot_dimension_numbers<[2], [1], [1], [2], [0, 0, 0, 1, 1, 2], [0], [0]>} : vector<8x8x8xbf16>, vector<8x8x4xbf16>, vector<8x8x4xf32> -> vector<8x8x4xf32>
    "tpu.trace_stop"() : () -> ()
    %27 = tpu.reciprocal %24 {approx = true} : vector<8x8x1xf32> -> vector<8x8x1xf32>
    %28 = vector.broadcast %27 : vector<8x8x1xf32> to vector<8x8x4xf32>
    %29 = arith.mulf %26, %28 : vector<8x8x4xf32>
    %30 = vector.shape_cast %29 : vector<8x8x4xf32> to vector<1x8x8x4xf32>
    %31 = tpu.transpose %30, [0, 2, 1, 3] : vector<1x8x8x4xf32> -> vector<1x8x8x4xf32>
    %32 = vector.shape_cast %31 : vector<1x8x8x4xf32> to vector<8x32xf32>
    %33 = arith.truncf %32 : vector<8x32xf32> to vector<8x32xbf16>
    %c0_8 = arith.constant 0 : index
    %c0_9 = arith.constant 0 : index
    %34 = vector.load %arg3[%c0_8, %c0_9] : memref<32x32xbf16, #tpu.memory_space<vmem>>, vector<32x32xbf16>
    %cst_10 = arith.constant dense<0.000000e+00> : vector<8x32xf32>
    %35 = tpu.matmul %33, %34, %cst_10 {dimension_numbers = #tpu.dot_dimension_numbers<[1], [0], [0], [1], [0, 0, 1, 1], [], []>} : vector<8x32xbf16>, vector<32x32xbf16>, vector<8x32xf32> -> vector<8x32xf32>
    %c0_11 = arith.constant 0 : index
    %c0_12 = arith.constant 0 : index
    %36 = vector.load %arg4[%c0_11, %c0_12] : memref<1x32xf32, #tpu.memory_space<vmem>>, vector<1x32xf32>
    %37 = vector.broadcast %36 : vector<1x32xf32> to vector<8x32xf32>
    %38 = arith.addf %35, %37 : vector<8x32xf32>
    %39 = vector.shape_cast %38 : vector<8x32xf32> to vector<1x8x32xf32>
    %c0_13 = arith.constant 0 : index
    %c0_14 = arith.constant 0 : index
    %c0_15 = arith.constant 0 : index
    %40 = vector.load %arg5[%c0_13, %c0_14, %c0_15] : memref<1x8x32xf32, #tpu.memory_space<vmem>>, vector<1x8x32xf32>
    tpu.vector_store %arg5[%c0_13, %c0_14, %c0_15], %39 {strides = array<i32>} : memref<1x8x32xf32, #tpu.memory_space<vmem>>, vector<1x8x32xf32>,
    return
  }
  func.func @transform_0(%arg0: i32) -> (i32, i32, i32) {
    %c0_i32 = arith.constant 0 : i32
    %c0_i32_0 = arith.constant 0 : i32
    %c0_i32_1 = arith.constant 0 : i32
    return %arg0, %c0_i32, %c0_i32_0 : i32, i32, i32
  }
  func.func @transform_1(%arg0: i32) -> (i32, i32) {
    %c0_i32 = arith.constant 0 : i32
    %c0_i32_0 = arith.constant 0 : i32
    %c0_i32_1 = arith.constant 0 : i32
    return %c0_i32, %c0_i32_0 : i32, i32
  }
  func.func @transform_2(%arg0: i32) -> (i32, i32) {
    %c0_i32 = arith.constant 0 : i32
    %c0_i32_0 = arith.constant 0 : i32
    %c0_i32_1 = arith.constant 0 : i32
    return %c0_i32, %c0_i32_0 : i32, i32
  }
  func.func @transform_3(%arg0: i32) -> (i32, i32) {
    %c0_i32 = arith.constant 0 : i32
    %c0_i32_0 = arith.constant 0 : i32
    %c0_i32_1 = arith.constant 0 : i32
    return %c0_i32, %c0_i32_0 : i32, i32
  }
  func.func @transform_4(%arg0: i32) -> (i32, i32, i32) {
    %c0_i32 = arith.constant 0 : i32
    %c0_i32_0 = arith.constant 0 : i32
    %c0_i32_1 = arith.constant 0 : i32
    return %arg0, %c0_i32, %c0_i32_0 : i32, i32, i32
  }
}

</mosaic_0001>

<bundles_post_ra>
// kernel: tpu_custom_call.1
= control target key start
LH: loop header
LB: loop body
LE: loop exit
PB: predicated region body
PF: predicated region fallthrough
CT: control target
= control target key end

     0   :  { %9 = vsyncpa [#allocation3], 0  ;;  %s3370_s0 = inlined_call_operand.hbm [shape: bf16[2,8,32], index: 0, kind: input, shape index: {}]   ;;  %s3371_s1 = inlined_call_operand.hbm [shape: bf16[32,96], index: 1, kind: input, shape index: {}]   ;;  %s3372_s2 = inlined_call_operand.hbm [shape: bf16[32,32], index: 2, kind: input, shape index: {}]   ;;  %s3373_s3 = inlined_call_operand.vmem [shape: f32[1,32], index: 3, kind: input, shape index: {}]   ;;  %s3374_s4 = inlined_call_operand.hbm [shape: f32[2,8,32], index: 4, kind: output, shape index: {}]  }
   0x1   :  { %11 = vsyncpa [#allocation3 + $0x1], 0 }
   0x2   :  { %12 = vsyncpa [#allocation6], 0 }
   0x3   :  { %13 = vsyncpa [#allocation4], 0 }
   0x4   :  { %15 = vsyncpa [#allocation4 + $0x1], 0  ;;  %s2802_s15 = smov 0   ;;  %s2804_s16 = smov 0  }
   0x5   :  { %s2806_s17 = smov 0   ;;  %s2808_s18 = smov 0  }
   0x6 LB: > { %s2823_s19 = sadd.s32 4294967295, %s2748_s18   ;;  %s2269_s20 = sadd.s32 4294967294, %s2748_s18   ;;  %s2748_s18 = sphi %s2808_s18, %s3394_s18   ;;  %s2744_s17 = sphi %s2806_s17, %s3393_s17   ;;  %s2740_s16 = sphi %s2804_s16, %s3392_s16   ;;  %s2736_s15 = sphi %s2802_s15, %s3391_s15  }
   0x7   : > { %p41_p0 = scmp.ne.s32.totalorder %s2740_s16, %s2736_s15  ;;  %p3375_p1 = scmp.eq.s32.totalorder %s2823_s19, 0 }
   0x8   : > { %p134_p3 = scmp.eq.s32.totalorder %s2269_s20, 1  ;;  %p2270_p5 = scmp.ge.s32.totalorder %s2748_s18, 1 }
   0x9   : > { %p2832_p4 = por %p3375_p1, %p41_p0  ;;  %p141_p7 = scmp.lt.s32.totalorder %s2748_s18, 3 }
   0xa   : > { %p2837_p6 = por %p134_p3, %p41_p0  ;;  %s2750_s24 = smov [#allocation5]  }
   0xb   : > { %s3378_s21 = scalar_select %p2832_p4, 1, 0 }
   0xc   : > { %s3379_s22 = scalar_select %p2837_p6, 1, 0 }
   0xd   : > { %p2842_p8 = pnand %p2270_p5, %p141_p7  ;;  %s153_s25 = sshll.u32 %s2750_s24, 4  ;;  %s2846_s25 = int_to_ptr.vmem [resolvable:$true] %s153_s25 }
   0xe   : > { %s2751_s27 = smov [#allocation7]   ;;  %s2592_s5 = scalar_lea.hbm %s3371_s1, 256 }
   0xf   : > { %p2478_p9 = pneg %p2842_p8  ;;  %s166_s28 = sshll.u32 %s2751_s27, 4  ;;  %s2857_s28 = int_to_ptr.vmem [resolvable:$true] %s166_s28 }
  0x10   : > { %p2593_p12 = scmp.ne.s32.totalorder %s3371_s1, %s2592_s5  ;;  %p2599_p5 = scmp.lt.u32.totalorder %s2592_s5, %s3371_s1 }
  0x11   : > { %p2853_p11 = pnand %p2478_p9, %p3375_p1 }
  0x13   : > { %p2594_p13 = pneg %p2853_p11 }
  0x15   : > { %p2595_p0 = pnand %p2594_p13, %p2593_p12 }
  0x17   : > { %p2596_p3 = pneg %p2595_p0 }
  0x19   : > { %p2601_p7 = pnand %p2599_p5, %p2596_p3 }
  0x1b   : > { %2604 = shalt.err (!%p2601_p7)
}
  0x1c   : > { %s2605_s10 = scalar_lea.vmem %s2846_s25, 256  ;;  %p2613_p2 = scmp.lt.s32.totalorder %s2846_s25, %s2846_s25 }
  0x1d   : > { %p2606_p9 = scmp.ne.s32.totalorder %s2846_s25, %s2605_s10  ;;  %p2614_p12 = scmp.lt.s32.totalorder %s2605_s10, %s2605_s10 }
  0x1f   : > { %p2608_p10 = pnand %p2606_p9, %p2594_p13  ;;  %p2615_p0 = por %p2614_p12, %p2613_p2 }
  0x21   : > { %p2609_p1 = pneg %p2608_p10 }
  0x23   : > { %p2616_p6 = pnand %p2615_p0, %p2609_p1 }
  0x25   : > { %2619 = shalt.err (!%p2616_p6)
}
  0x26   : > { %s2752_s11 = smov 64   ;;  %s2753_s12 = smov 4  }
  0x27   : > { %2481 = dma.hbm_to_vmem [thread:$0]  (!%p2853_p11), %s3371_s1, 256, %s2846_s25, [#allocation6], %s2752_s11, %s2752_s11, %s2753_s12  }
  0x28   : > { %s2620_s27 = scalar_lea.hbm %s3372_s2, 256 }
  0x29   : > { %p2621_p2 = scmp.ne.s32.totalorder %s3372_s2, %s2620_s27  ;;  %p2627_p10 = scmp.lt.u32.totalorder %s2620_s27, %s3372_s2 }
  0x2b   : > { %p2623_p1 = pnand %p2621_p2, %p2594_p13 }
  0x2d   : > { %p2624_p6 = pneg %p2623_p1 }
  0x2f   : > { %p2629_p3 = pnand %p2627_p10, %p2624_p6 }
  0x31   : > { %2632 = shalt.err (!%p2629_p3)
}
  0x32   : > { %s2633_s25 = scalar_lea.vmem %s2857_s28, 256  ;;  %p2641_p12 = scmp.lt.s32.totalorder %s2857_s28, %s2857_s28 }
  0x33   : > { %p2634_p5 = scmp.ne.s32.totalorder %s2857_s28, %s2633_s25  ;;  %p2642_p0 = scmp.lt.s32.totalorder %s2633_s25, %s2633_s25 }
  0x35   : > { %p2636_p7 = pnand %p2634_p5, %p2594_p13  ;;  %p2643_p2 = por %p2642_p0, %p2641_p12 }
  0x37   : > { %p2637_p9 = pneg %p2636_p7 }
  0x39   : > { %p2644_p1 = pnand %p2643_p2, %p2637_p9 }
  0x3b   : > { %2647 = shalt.err (!%p2644_p1)
}
  0x3c   : > { %2484 = dma.hbm_to_vmem [thread:$0]  (!%p2853_p11), %s3372_s2, 256, %s2857_s28, [#allocation6], %s2752_s11, %s2752_s11, %s2753_s12  }
  0x3d   : > { %s2912_s9 = sadd.s32 1, %s2748_s18   ;;  %s28_s26 = sadd.s32 1, %s2744_s17 }
  0x3e   : > { %s25_s10 = ssub.s32 %s2748_s18, %s2912_s9  ;;  %p35_p13 = scmp.ne.s32.totalorder %s2744_s17, %s2740_s16 }
  0x3f   : > { %p26_p6 = scmp.eq.s32.totalorder %s25_s10, 0  ;;  %p36_p10 = scmp.eq.s32.totalorder %s2748_s18, 0 }
  0x40   : > { %p3382_p3 = scmp.eq.s32.totalorder %s2823_s19, 1  ;;  %p2495_p7 = scmp.lt.s32.totalorder %s2748_s18, 2 }
  0x41   : > { %s2928_s14 = scalar_select %p26_p6, %s2744_s17, %s28_s26  }
  0x42   : > { %p2922_p5 = por %p3382_p3, %p35_p13  ;;  %p37_p9 = por %p36_p10, %p35_p13 }
  0x43   : > { %s183_s20 = sand.u32 1, %s2744_s17   ;;  %s2275_s28 = sshll.u32 %s2748_s18, 6 }
  0x44   : > { %s3383_s13 = scalar_select %p2922_p5, 1, 0 }
  0x45   : > { %s2274_s24 = sshll.u32 %s183_s20, 2  ;;  %s2935_s27 = scalar_lea.hbm %s3370_s0, %s2275_s28 }
  0x46   : > { %s187_s29 = scalar_lea.vmem [#allocation2], %s2274_s24  ;;  %p2939_p11 = pnand %p2495_p7, %p37_p9 }
  0x47   : > { %s194_s30 = sshll.u32 %s187_s29, 4  ;;  %s184_s6 = scalar_lea.sflag [#allocation3], %s183_s20  ;;  %s2937_s30 = int_to_ptr.vmem [resolvable:$true] %s194_s30 }
  0x48   : > { %s2648_s25 = scalar_lea.hbm %s2935_s27, 64  ;;  %p2650_p0 = pneg %p2939_p11 }
  0x49   : > { %p2649_p12 = scmp.ne.s32.totalorder %s2935_s27, %s2648_s25  ;;  %s2653_s26 = scalar_lea.hbm %s3370_s0, 128 }
  0x4a   : > { %p2654_p13 = scmp.lt.u32.totalorder %s2935_s27, %s3370_s0  ;;  %p2655_p6 = scmp.lt.u32.totalorder %s2653_s26, %s2648_s25 }
  0x4b   : > { %p2651_p2 = pnand %p2650_p0, %p2649_p12  ;;  %p2657_p3 = scmp.lt.u32.totalorder %s2648_s25, %s2935_s27 }
  0x4c   : > { %p2656_p10 = por %p2655_p6, %p2654_p13 }
  0x4d   : > { %p2652_p1 = pneg %p2651_p2 }
  0x4e   : > { %p2658_p7 = por %p2657_p3, %p2656_p10 }
  0x50   : > { %p2659_p9 = pnand %p2658_p7, %p2652_p1 }
  0x52   : > { %2662 = shalt.err (!%p2659_p9)
}
  0x53   : > { %s2663_s20 = scalar_lea.vmem %s2937_s30, 64  ;;  %s2754_s28 = smov [#allocation2]  }
  0x54   : > { %p2664_p12 = scmp.ne.s32.totalorder %s2937_s30, %s2663_s20  ;;  %s2668_s11 = sshll.u32 %s2754_s28, 4  ;;  %s2669_s11 = int_to_ptr.vmem [resolvable:$false] %s2668_s11 }
  0x55   : > { %s2670_s12 = scalar_lea.vmem %s2669_s11, 128  ;;  %p2671_p4 = scmp.lt.s32.totalorder %s2937_s30, %s2669_s11 }
  0x56   : > { %p2666_p2 = pnand %p2664_p12, %p2650_p0  ;;  %p2672_p13 = scmp.lt.s32.totalorder %s2670_s12, %s2663_s20 }
  0x58   : > { %p2667_p5 = pneg %p2666_p2  ;;  %p2673_p6 = por %p2672_p13, %p2671_p4 }
  0x5a   : > { %p2674_p10 = pnand %p2673_p6, %p2667_p5 }
  0x5c   : > { %2677 = shalt.err (!%p2674_p10)
}
  0x5d   : > { %2488 = dma.hbm_to_vmem [thread:$0]  (!%p2939_p11), %s2935_s27, 64, %s2937_s30, %s184_s6  }
  0x5e   : > { %203 = sbr.rel (%p2842_p8) target bundleno = 1631 (0x65f), region = 36  ;;  %s2971_s29 = sand.u32 (!%p2842_p8), 1, %s2740_s16  }
  0x5f   : > { %s2277_s25 = sshll.u32 (!%p2842_p8), %s2971_s29, 2  ;;  %s206_s7 = scalar_lea.sflag (!%p2842_p8), [#allocation3], %s2971_s29 }
  0x60   : > { %s209_s8 = scalar_lea.vmem (!%p2842_p8), [#allocation2], %s2277_s25  ;;  %p3385_p4 = scmp.ne.s32.totalorder (!%p2842_p8), %s3378_s21, 0 }
  0x65   : > { %2723 = dma.done.wait (%p3385_p4), %s206_s7, 64  }
  0x66   : > { %2725 = vsyncadd (%p3385_p4), %s206_s7, 4294967232  ;;  %p3386_p5 = scmp.eq.s32.totalorder %s2823_s19, 0 }
  0x68   : > { %2727 = dma.done.wait (%p3386_p5), [#allocation6], 512   ;;  %p3387_p11 = pmov %p3386_p5 }
  0x69   : > { %v2755_v0 = vmov 0.0   ;;  %vm2756_vm0 = vmmov 0   ;;  %v2556_v1 = vld [vmem:[#allocation5] sm:$0xff]   ;;  %v2557_v2 = vld [vmem:[#allocation5 + $0x8] sm:$0xff]   ;;  %v243_v3 = vld [vmem:[%s209_s8] sm:$0xf]  ;;  %v331_v11 = vlaneseq }
  0x6a   : > { %2729 = vsyncadd (%p3387_p11), [#allocation6], 4294966784  ;;  %2354 = vmatprep.subr.bf16.mxu0 %v2755_v0  ;;  %2358 = vmatprep.mubr.msk.bf16.mxu0 %vm2756_vm0, %v2755_v0  ;;  %vm260_vm1 = vcmask 261120   ;;  %s2757_s21 = smov 116   ;;  %s2758_s23 = smov 124   ;;  %v2768_v40 = vmov 0  }
  0x6b   : > { %2362 = vmatprep.subr.bf16.mxu1 %v2755_v0  ;;  %2364 = vmatprep.mubr.msk.bf16.mxu1 %vm2756_vm0, %v2755_v0  ;;  %s2759_s27 = smov 112   ;;  %s2760_s30 = smov 120   ;;  %v2765_v9 = vmov 1983009808   ;;  %v332_v15 = vshrl.u32 %v331_v11, 7  ;;  %vm951_vm2 = vcmask 31744  }
  0x6c   : > { %2355 = vmatpush3.bf16.msra.mxu0 %v2556_v1  ;;  %s2761_s5 = smov 104   ;;  %s2762_s6 = smov 108   ;;  %v329_v10 = vunpack.c.l.s4 %v2765_v9  ;;  %v2766_v16 = vmov 1934713408   ;;  %vm1320_vm3 = vcmask 64512   ;;  %vm1404_vm4 = vcmask 1043456  }
  0x6d   : > { %2356 = vmatprep.subr.bf16.mxu0 %v2755_v0  ;;  %s2763_s26 = smov 96   ;;  %s2764_s10 = smov 100   ;;  %v346_v17 = vunpack.c.l.s4 %v2766_v16  ;;  %vm2088_vm5 = vcmask 97280   ;;  %vm2090_vm6 = vcmask 130048   ;;  %vm2092_vm7 = vcmask 162816  }
  0x6e   : > { %v330_v14 = vunpack.c.0.s8 %v329_v10  ;;  %s2767_s24 = smov 64   ;;  %s2769_s20 = smov 8   ;;  %vm2094_vm8 = vcmask 195584   ;;  %vm2096_vm9 = vcmask 228352  }
  0x6f   : > { %v347_v22 = vunpack.c.0.s8 %v346_v17  ;;  %s2770_s28 = smov 4   ;;  %s2771_s11 = smov 12  }
  0x70   : > { %2357 = vmatpush3.bf16.msra.mxu0 %v2557_v2  ;;  %v2998_v20 = vsub.s32 %v330_v14, %v332_v15  ;;  %s2772_s12 = smov 20   ;;  %s2773_s25 = smov 16  }
  0x71   : > { %2368 = vmatprep.subr.bf16.mxu0 %v2755_v0  ;;  %v3006_v28 = vsub.s32 %v347_v22, %v332_v15  ;;  %s2774_s7 = smov 28   ;;  %s2775_s8 = smov 24  }
  0x72   : > { %p3388_p0 = scmp.ne.s32.totalorder %s3383_s13, 0 }
  0x73   : > { %2359 = vmatmul.mubr.msk.bf16.vlgmr.msra.gmra.mrb[0].mxu0 %vm260_vm1, %v243_v3 }
  0x74   : > { %2370 = vmatprep.mubr.msk.bf16.mxu0 %vm2756_vm0, %v2755_v0 }
 0x146   : > { %v298_v4 = vpop.f32.mrb[0].mxu0 }
 0x147   : > { %v304_v5 = vpack.c.bf16 %v298_v4, %v298_v4  ;;  %v2360_v6 = vpop.f32.mrb[1].mxu0 }
 0x148   : > { %v301_v7 = vpop.f32.mrb[2].mxu0 }
 0x149   : > { %312 = vrot.lane.b32.xlu1 %v304_v5, %s2757_s21  ;;  %306 = vrot.lane.b32.xlu0 %v304_v5, %s2758_s23  ;;  %v2361_v8 = vpop.f32.mrb[3].mxu0  ;;  %s2280_s21 = sshll.u32 %s2971_s29, 3 }
 0x14d   : > { %315 = vrot.lane.b32.xlu1 %v304_v5, %s2759_s27  ;;  %309 = vrot.lane.b32.xlu0 %v304_v5, %s2760_s30  ;;  %s2313_s30 = sshll.u32 %s2823_s19, 7  ;;  %s2167_s19 = scalar_lea.sflag [#allocation4], %s2971_s29 }
 0x151   : > { %321 = vrot.lane.b32.xlu1 %v304_v5, %s2761_s5  ;;  %318 = vrot.lane.b32.xlu0 %v304_v5, %s2762_s6  ;;  %s241_s5 = scalar_lea.vmem [#allocation8], %s2280_s21 }
 0x152   : > { %s2180_s6 = sshll.u32 %s241_s5, 4  ;;  %s3327_s6 = int_to_ptr.vmem [resolvable:$true] %s2180_s6 }
 0x155   : > { %519 = vrot.lane.b32.xlu1 %v304_v5, %s2763_s26  ;;  %324 = vrot.lane.b32.xlu0 %v304_v5, %s2764_s10 }
 0x1bb   : > { %v313_v12 = vpop.permute.xlu1 %312  ;;  %v307_v13 = vpop.permute.xlu0 %306 }
 0x1bc   : > { %521 = vrot.lane.b32.xlu0 %v307_v13, %s2763_s26 }
 0x1bf   : > { %v316_v18 = vpop.permute.xlu1 %315  ;;  %v310_v19 = vpop.permute.xlu0 %309 }
 0x1c0   : > { %525 = vrot.lane.b32.xlu0 %v313_v12, %s2763_s26  ;;  %523 = vrot.lane.b32.xlu1 %v310_v19, %s2763_s26  ;;  %v327_v21 = vcombine.low %v304_v5, %v316_v18 }
 0x1c2   : > { %v334_v27 = vrot.slane %v327_v21, %v2998_v20 }
 0x1c3   : > { %v3000_v23 = vpop.permute.xlu1 %321  ;;  %v319_v24 = vpop.permute.xlu0 %318 }
 0x1c4   : > { %v335_v25 = vcombine.low %v310_v19, %v3000_v23  ;;  %v361_v26 = vcombine.low %v307_v13, %v319_v24  ;;  %527 = vrot.lane.b32.xlu1 %v316_v18, %s2763_s26  ;;  %529 = vrot.lane.b32.xlu0 %v319_v24, %s2763_s26 }
 0x1c6   : > { %v342_v29 = vrot.slane %v335_v25, %v2998_v20  ;;  %v368_v36 = vrot.slane %v361_v26, %v2998_v20 }
 0x1c7   : > { %v3009_v30 = vpop.permute.xlu0 %324 }
 0x1c8   : > { %v343_v31 = vcombine.low %v334_v27, %v342_v29  ;;  %v344_v32 = vcombine.high %v334_v27, %v342_v29  ;;  %v369_v33 = vcombine.low %v313_v12, %v3009_v30  ;;  %531 = vrot.lane.b32.xlu1 %v3000_v23, %s2763_s26  ;;  %533 = vrot.lane.b32.xlu0 %v3009_v30, %s2763_s26 }
 0x1ca   : > { %v351_v34 = vrot.slane %v343_v31, %v3006_v28  ;;  %v376_v35 = vrot.slane %v369_v33, %v2998_v20  ;;  %v358_v37 = vrot.slane %v344_v32, %v3006_v28 }
 0x1cc   : > { %737 = vrot.lane.b32.xlu1 %v307_v13, %s2767_s24  ;;  %735 = vrot.lane.b32.xlu0 %v304_v5, %s2767_s24  ;;  %v377_v38 = vcombine.low %v368_v36, %v376_v35  ;;  %v378_v39 = vcombine.high %v368_v36, %v376_v35  ;;  %v359_v41 = vcombine.high %v351_v34, %v2768_v40  ;;  %v399_v45 = vshrl.u32 %v351_v34, 16 }
 0x1cd   : > { %v360_v44 = vcombine.high %v358_v37, %v2768_v40  ;;  %v415_v51 = vshrl.u32 %v358_v37, 16 }
 0x1ce   : > { %v385_v42 = vrot.slane %v377_v38, %v3006_v28  ;;  %v392_v43 = vrot.slane %v378_v39, %v3006_v28  ;;  %v407_v50 = vshrl.u32 %v359_v41, 16 }
 0x1cf   : > { %v423_v58 = vshrl.u32 %v360_v44, 16 }
 0x1d0   : > { %739 = vrot.lane.b32.xlu1 %v310_v19, %s2767_s24  ;;  %741 = vrot.lane.b32.xlu0 %v313_v12, %s2767_s24  ;;  %v393_v46 = vcombine.high %v385_v42, %v2768_v40  ;;  %v394_v47 = vcombine.high %v392_v43, %v2768_v40  ;;  %v397_v48 = vpack.i.b16 %v385_v42, %v351_v34  ;;  %v400_v49 = vshrl.u32 %v385_v42, 16 }
 0x1d1   : > { %v413_v52 = vpack.i.b16 %v392_v43, %v358_v37  ;;  %v416_v53 = vshrl.u32 %v392_v43, 16 }
 0x1d2   : > { %v401_v54 = vpack.i.b16 %v400_v49, %v399_v45  ;;  %v405_v55 = vpack.i.b16 %v393_v46, %v359_v41  ;;  %v408_v56 = vshrl.u32 %v393_v46, 16  ;;  %v421_v57 = vpack.i.b16 %v394_v47, %v360_v44  ;;  %v520_v41 = vpop.permute.xlu1 %519 }
 0x1d3   : > { %v417_v59 = vpack.i.b16 %v416_v53, %v415_v51  ;;  %v424_v60 = vshrl.u32 %v394_v47, 16  ;;  %v427_v61 = vcombine.low %v397_v48, %v413_v52 }
 0x1d4   : > { %743 = vrot.lane.b32.xlu1 %v316_v18, %s2767_s24  ;;  %745 = vrot.lane.b32.xlu0 %v319_v24, %s2767_s24  ;;  %v409_v62 = vpack.i.b16 %v408_v56, %v407_v50  ;;  %v435_v63 = vcombine.low %v405_v55, %v421_v57 }
 0x1d5   : > { %v425_v1 = vpack.i.b16 %v424_v60, %v423_v58  ;;  %v461_v2 = vcombine.low %v401_v54, %v417_v59  ;;  %v434_v3 = vrot.slane %v427_v61, %v2998_v20 }
 0x1d6   : > { %v442_v4 = vrot.slane %v435_v63, %v2998_v20 }
 0x1d7   : > { %v469_v5 = vcombine.low %v409_v62, %v425_v1  ;;  %v468_v8 = vrot.slane %v461_v2, %v2998_v20 }
 0x1d8   : > { %v443_v6 = vcombine.low %v434_v3, %v442_v4  ;;  %v444_v7 = vcombine.high %v434_v3, %v442_v4 }
 0x1d9   : > { %v476_v9 = vrot.slane %v469_v5, %v2998_v20 }
 0x1da   : > { %v3037_v10 = vrot.slane %v443_v6, %v3006_v28  ;;  %v3040_v11 = vrot.slane %v444_v7, %v3006_v28 }
 0x1db   : > { %v477_v12 = vcombine.low %v468_v8, %v476_v9  ;;  %v478_v13 = vcombine.high %v468_v8, %v476_v9 }
 0x1dc   : > { %v3047_v15 = vcombine.high %v3037_v10, %v2768_v40  ;;  %v498_v17 = vshrl.u32 %v3037_v10, 16  ;;  %v3055_v18 = vcombine.high %v3040_v11, %v2768_v40  ;;  %v510_v25 = vshrl.u32 %v3040_v11, 16 }
 0x1dd   : > { %v3043_v14 = vrot.slane %v477_v12, %v3006_v28  ;;  %v3050_v16 = vrot.slane %v478_v13, %v3006_v28 }
 0x1de   : > { %v504_v32 = vshrl.u32 %v3047_v15, 16  ;;  %v516_v36 = vshrl.u32 %v3055_v18, 16 }
 0x1df   : > { %v497_v19 = vpack.i.b16 %v3043_v14, %v3037_v10  ;;  %v499_v21 = vshrl.u32 %v3043_v14, 16  ;;  %v3062_v22 = vcombine.high %v3043_v14, %v2768_v40  ;;  %v509_v24 = vpack.i.b16 %v3050_v16, %v3040_v11 }
 0x1e0   : > { %v511_v26 = vshrl.u32 %v3050_v16, 16  ;;  %v3070_v27 = vcombine.high %v3050_v16, %v2768_v40 }
 0x1e1   : > { %v3072_v29 = vpack.i.b16 %v499_v21, %v498_v17  ;;  %v503_v31 = vpack.i.b16 %v3062_v22, %v3047_v15  ;;  %v505_v33 = vshrl.u32 %v3062_v22, 16 }
 0x1e2   : > { %v3078_v34 = vpack.i.b16 %v511_v26, %v510_v25  ;;  %v515_v35 = vpack.i.b16 %v3070_v27, %v3055_v18  ;;  %v517_v37 = vshrl.u32 %v3070_v27, 16 }
 0x1e3   : > { %v3084_v38 = vpack.i.b16 %v505_v33, %v504_v32 }
 0x1e4   : > { %v3086_v39 = vpack.i.b16 %v517_v37, %v516_v36 }
 0x22e   : > { %v522_v42 = vpop.permute.xlu0 %521 }
 0x232   : > { %v524_v43 = vpop.permute.xlu1 %523  ;;  %v526_v44 = vpop.permute.xlu0 %525 }
 0x236   : > { %v528_v45 = vpop.permute.xlu1 %527  ;;  %v530_v46 = vpop.permute.xlu0 %529 }
 0x237   : > { %v543_v47 = vcombine.low %v520_v41, %v528_v45  ;;  %v577_v48 = vcombine.low %v522_v42, %v530_v46 }
 0x239   : > { %v550_v53 = vrot.slane %v543_v47, %v2998_v20  ;;  %v584_v54 = vrot.slane %v577_v48, %v2998_v20 }
 0x23a   : > { %v532_v49 = vpop.permute.xlu1 %531  ;;  %v534_v50 = vpop.permute.xlu0 %533 }
 0x23b   : > { %v551_v51 = vcombine.low %v524_v43, %v532_v49  ;;  %v585_v52 = vcombine.low %v526_v44, %v534_v50 }
 0x23d   : > { %v558_v55 = vrot.slane %v551_v51, %v2998_v20  ;;  %v592_v56 = vrot.slane %v585_v52, %v2998_v20 }
 0x23f   : > { %v559_v57 = vcombine.low %v550_v53, %v558_v55  ;;  %v560_v58 = vcombine.high %v550_v53, %v558_v55  ;;  %v593_v59 = vcombine.low %v584_v54, %v592_v56  ;;  %v594_v60 = vcombine.high %v584_v54, %v592_v56 }
 0x241   : > { %v567_v61 = vrot.slane %v559_v57, %v3006_v28  ;;  %v574_v62 = vrot.slane %v560_v58, %v3006_v28  ;;  %v601_v63 = vrot.slane %v593_v59, %v3006_v28  ;;  %v608_v1 = vrot.slane %v594_v60, %v3006_v28 }
 0x243   : > { %v575_v2 = vcombine.high %v567_v61, %v2768_v40  ;;  %v576_v3 = vcombine.high %v574_v62, %v2768_v40  ;;  %v615_v4 = vshrl.u32 %v567_v61, 16  ;;  %v631_v5 = vshrl.u32 %v574_v62, 16 }
 0x244   : > { %v609_v6 = vcombine.high %v601_v63, %v2768_v40  ;;  %v610_v7 = vcombine.high %v608_v1, %v2768_v40  ;;  %v613_v8 = vpack.i.b16 %v601_v63, %v567_v61  ;;  %v616_v9 = vshrl.u32 %v601_v63, 16 }
 0x245   : > { %v623_v12 = vshrl.u32 %v575_v2, 16  ;;  %v639_v13 = vshrl.u32 %v576_v3, 16  ;;  %v629_v17 = vpack.i.b16 %v608_v1, %v574_v62  ;;  %v632_v21 = vshrl.u32 %v608_v1, 16 }
 0x246   : > { %v617_v25 = vpack.i.b16 %v616_v9, %v615_v4  ;;  %v621_v26 = vpack.i.b16 %v609_v6, %v575_v2  ;;  %v624_v32 = vshrl.u32 %v609_v6, 16  ;;  %v637_v33 = vpack.i.b16 %v610_v7, %v576_v3 }
 0x247   : > { %v633_v36 = vpack.i.b16 %v632_v21, %v631_v5  ;;  %v640_v37 = vshrl.u32 %v610_v7, 16  ;;  %v643_v42 = vcombine.low %v613_v8, %v629_v17 }
 0x248   : > { %v625_v41 = vpack.i.b16 %v624_v32, %v623_v12  ;;  %v651_v43 = vcombine.low %v621_v26, %v637_v33 }
 0x249   : > { %v641_v44 = vpack.i.b16 %v640_v37, %v639_v13  ;;  %v677_v45 = vcombine.low %v617_v25, %v633_v36  ;;  %v650_v46 = vrot.slane %v643_v42, %v2998_v20 }
 0x24a   : > { %v658_v47 = vrot.slane %v651_v43, %v2998_v20 }
 0x24b   : > { %v685_v48 = vcombine.low %v625_v41, %v641_v44  ;;  %v684_v50 = vrot.slane %v677_v45, %v2998_v20 }
 0x24c   : > { %v659_v49 = vcombine.low %v650_v46, %v658_v47  ;;  %v660_v4 = vcombine.high %v650_v46, %v658_v47 }
 0x24d   : > { %v692_v51 = vrot.slane %v685_v48, %v2998_v20 }
 0x24e   : > { %v667_v52 = vrot.slane %v659_v49, %v3006_v28  ;;  %v674_v8 = vrot.slane %v660_v4, %v3006_v28  ;;  %v738_v4 = vpop.permute.xlu1 %737 }
 0x24f   : > { %v693_v53 = vcombine.low %v684_v50, %v692_v51  ;;  %v694_v1 = vcombine.high %v684_v50, %v692_v51 }
 0x250   : > { %v714_v56 = vshrl.u32 %v667_v52, 16  ;;  %v675_v61 = vcombine.high %v667_v52, %v2768_v40  ;;  %v726_v14 = vshrl.u32 %v674_v8, 16  ;;  %v676_v17 = vcombine.high %v674_v8, %v2768_v40 }
 0x251   : > { %v701_v54 = vrot.slane %v693_v53, %v3006_v28  ;;  %v708_v6 = vrot.slane %v694_v1, %v3006_v28 }
 0x252   : > { %v720_v3 = vshrl.u32 %v675_v61, 16  ;;  %v732_v22 = vshrl.u32 %v676_v17, 16 }
 0x253   : > { %v713_v55 = vpack.i.b16 %v701_v54, %v667_v52  ;;  %v715_v57 = vshrl.u32 %v701_v54, 16  ;;  %v709_v58 = vcombine.high %v701_v54, %v2768_v40  ;;  %v727_v12 = vshrl.u32 %v708_v6, 16 }
 0x254   : > { %v725_v10 = vpack.i.b16 %v708_v6, %v674_v8  ;;  %v710_v13 = vcombine.high %v708_v6, %v2768_v40  ;;  %v740_v6 = vpop.permute.xlu1 %739 }
 0x255   : > { %v956_v59 = vsel %vm951_vm2, %v713_v55, 0  ;;  %v716_v60 = vpack.i.b16 %v715_v57, %v714_v56  ;;  %v721_v63 = vshrl.u32 %v709_v58, 16  ;;  %v719_v2 = vpack.i.b16 %v709_v58, %v675_v61 }
 0x256   : > { %2363 = vmatpush3.bf16.xpose.msra.mxu1 %v956_v59  ;;  %v733_v25 = vshrl.u32 %v710_v13, 16  ;;  %v731_v15 = vpack.i.b16 %v710_v13, %v676_v17 }
 0x257   : > { %v1002_v62 = vsel %vm951_vm2, %v716_v60, 0  ;;  %2374 = vmatprep.subr.bf16.mxu1 %v2755_v0  ;;  %v722_v5 = vpack.i.b16 %v721_v63, %v720_v3  ;;  %v1048_v7 = vsel %vm951_vm2, %v719_v2, 0 }
 0x258   : > { %2369 = vmatpush3.bf16.xpose.msra.mxu0 %v1002_v62  ;;  %v744_v8 = vpop.permute.xlu1 %743 }
 0x259   : > { %2380 = vmatprep.subr.bf16.mxu0 %v2755_v0  ;;  %v1094_v9 = vsel %vm951_vm2, %v722_v5, 0  ;;  %v736_v5 = vpop.permute.xlu0 %735 }
 0x25d   : > { %2365 = vmatmul.mubr.msk.bf16.vlgmr.msra.gmra.mrb[0].mxu1 %vm951_vm2, %v497_v19  ;;  %v728_v19 = vpack.i.b16 %v727_v12, %v726_v14 }
 0x25e   : > { %2375 = vmatpush3.bf16.xpose.msra.mxu1 %v1048_v7  ;;  %2376 = vmatprep.mubr.msk.bf16.mxu1 %vm2756_vm0, %v2755_v0  ;;  %v742_v7 = vpop.permute.xlu0 %741 }
 0x25f   : > { %2371 = vmatmul.mubr.msk.bf16.vlgmr.msra.gmra.mrb[4].mxu0 %vm951_vm2, %v3072_v29  ;;  %2386 = vmatprep.subr.bf16.mxu1 %v2755_v0  ;;  %v1140_v29 = vsel %vm951_vm2, %v725_v10, 0  ;;  %v1186_v21 = vsel %vm951_vm2, %v728_v19, 0  ;;  %v759_v19 = vcombine.low %v736_v5, %v744_v8 }
 0x260   : > { %2381 = vmatpush3.bf16.xpose.msra.mxu0 %v1094_v9  ;;  %2382 = vmatprep.mubr.msk.bf16.mxu0 %vm2756_vm0, %v2755_v0 }
 0x261   : > { %2392 = vmatprep.subr.bf16.mxu0 %v2755_v0 }
 0x262   : > { %v746_v9 = vpop.permute.xlu0 %745 }
 0x265   : > { %2377 = vmatmul.mubr.msk.bf16.vlgmr.msra.gmra.mrb[4].mxu1 %vm951_vm2, %v503_v31  ;;  %v734_v31 = vpack.i.b16 %v733_v25, %v732_v22 }
 0x266   : > { %2387 = vmatpush3.bf16.xpose.msra.mxu1 %v1140_v29  ;;  %2388 = vmatprep.mubr.msk.bf16.mxu1 %vm2756_vm0, %v2755_v0 }
 0x267   : > { %2383 = vmatmul.mubr.msk.bf16.vlgmr.msra.gmra.mrb[8].mxu0 %vm951_vm2, %v3084_v38  ;;  %2398 = vmatprep.subr.bf16.mxu1 %v2755_v0  ;;  %v1232_v38 = vsel %vm951_vm2, %v731_v15, 0  ;;  %v1278_v26 = vsel %vm951_vm2, %v734_v31, 0  ;;  %v766_v31 = vrot.slane %v759_v19, %v2998_v20 }
 0x268   : > { %2393 = vmatpush3.bf16.xpose.msra.mxu0 %v1186_v21  ;;  %2394 = vmatprep.mubr.msk.bf16.mxu0 %vm2756_vm0, %v2755_v0  ;;  %v793_v21 = vcombine.low %v738_v4, %v746_v9 }
 0x269   : > { %2404 = vmatprep.subr.bf16.mxu0 %v2755_v0 }
 0x26d   : > { %2389 = vmatmul.mubr.msk.bf16.vlgmr.msra.gmra.mrb[8].mxu1 %vm951_vm2, %v509_v24 }
 0x26e   : > { %2399 = vmatpush3.bf16.xpose.msra.mxu1 %v1232_v38  ;;  %2400 = vmatprep.mubr.msk.bf16.mxu1 %vm2756_vm0, %v2755_v0 }
 0x26f   : > { %2395 = vmatmul.mubr.msk.bf16.vlgmr.msra.gmra.mrb[12].mxu0 %vm951_vm2, %v3078_v34  ;;  %2410 = vmatprep.subr.bf16.mxu1 %v2755_v0 }
 0x270   : > { %2405 = vmatpush3.bf16.xpose.msra.mxu0 %v1278_v26  ;;  %2406 = vmatprep.mubr.msk.bf16.mxu0 %vm2756_vm0, %v2755_v0 }
 0x271   : > { %2416 = vmatprep.subr.bf16.mxu0 %v2755_v0 }
 0x275   : > { %2401 = vmatmul.mubr.msk.bf16.vlgmr.msra.gmra.mrb[12].mxu1 %vm951_vm2, %v515_v35 }
 0x276   : > { %2412 = vmatprep.mubr.msk.bf16.mxu1 %vm2756_vm0, %v2755_v0 }
 0x277   : > { %2407 = vmatmul.mubr.msk.bf16.vlgmr.msra.gmra.mrb[16].mxu0 %vm951_vm2, %v3086_v39 }
 0x278   : > { %2418 = vmatprep.mubr.msk.bf16.mxu0 %vm2756_vm0, %v2755_v0 }
 0x330   : > { %v992_v11 = vpop.f32.mrb[0].mxu1 }
 0x331   : > { %v2366_v16 = vpop.f32.mrb[1].mxu1  ;;  %v1321_v24 = vsel %vm1320_vm3, %v992_v11, -inf }
 0x332   : > { %1322 = vmax.xlane.f32.xlu1 %v1321_v24  ;;  %v995_v34 = vpop.f32.mrb[2].mxu1  ;;  %v1038_v32 = vpop.f32.mrb[4].mxu0  ;;  %v800_v16 = vrot.slane %v793_v21, %v2998_v20 }
 0x333   : > { %v2367_v18 = vpop.f32.mrb[3].mxu1  ;;  %v2372_v27 = vpop.f32.mrb[5].mxu0  ;;  %v1324_v35 = vsel %vm1320_vm3, %v1038_v32, -inf }
 0x334   : > { %1325 = vmax.xlane.f32.xlu0 %v1324_v35  ;;  %v1041_v33 = vpop.f32.mrb[6].mxu0 }
 0x335   : > { %v2373_v36 = vpop.f32.mrb[7].mxu0 }
 0x338   : > { %v3170_v37 = vpop.f32.mrb[4].mxu1 }
 0x339   : > { %v2378_v39 = vpop.f32.mrb[5].mxu1 }
 0x33a   : > { %v1087_v41 = vpop.f32.mrb[6].mxu1  ;;  %v3172_v42 = vpop.f32.mrb[8].mxu0 }
 0x33b   : > { %v2379_v43 = vpop.f32.mrb[7].mxu1  ;;  %v2384_v44 = vpop.f32.mrb[9].mxu0  ;;  %v1330_v63 = vsel %vm1320_vm3, %v3172_v42, -inf }
 0x33c   : > { %v1133_v45 = vpop.f32.mrb[10].mxu0 }
 0x33d   : > { %v2385_v46 = vpop.f32.mrb[11].mxu0 }
 0x340   : > { %v3174_v47 = vpop.f32.mrb[8].mxu1 }
 0x341   : > { %v2390_v48 = vpop.f32.mrb[9].mxu1 }
 0x342   : > { %v1179_v49 = vpop.f32.mrb[10].mxu1  ;;  %v3176_v50 = vpop.f32.mrb[12].mxu0 }
 0x343   : > { %747 = vrot.lane.b32.xlu1 %v3000_v23, %s2767_s24  ;;  %v2391_v51 = vpop.f32.mrb[11].mxu1  ;;  %v2396_v52 = vpop.f32.mrb[13].mxu0  ;;  %v1327_v23 = vsel %vm1320_vm3, %v3170_v37, -inf  ;;  %v1336_v1 = vsel %vm1320_vm3, %v3176_v50, -inf }
 0x344   : > { %v1225_v53 = vpop.f32.mrb[14].mxu0 }
 0x345   : > { %v2397_v54 = vpop.f32.mrb[15].mxu0 }
 0x348   : > { %v3180_v55 = vpop.f32.mrb[12].mxu1 }
 0x349   : > { %v2402_v56 = vpop.f32.mrb[13].mxu1  ;;  %v1339_v3 = vsel %vm1320_vm3, %v3180_v55, -inf }
 0x34a   : > { %v1271_v57 = vpop.f32.mrb[14].mxu1  ;;  %749 = vrot.lane.b32.xlu0 %v3009_v30, %s2767_s24  ;;  %v3184_v58 = vpop.f32.mrb[16].mxu0  ;;  %v1333_v30 = vsel %vm1320_vm3, %v3174_v47, -inf  ;;  %s3325_s24 = scalar_lea.hbm %s3374_s4, %s2313_s30 }
 0x34b   : > { %v2403_v59 = vpop.f32.mrb[15].mxu1  ;;  %v2408_v60 = vpop.f32.mrb[17].mxu0  ;;  %v1342_v2 = vsel %vm1320_vm3, %v3184_v58, -inf }
 0x34c   : > { %v1317_v61 = vpop.f32.mrb[18].mxu0 }
 0x34d   : > { %v2409_v62 = vpop.f32.mrb[19].mxu0 }
 0x367   : > { %1328 = vmax.xlane.f32.xlu1 %v1327_v23 }
 0x369   : > { %1331 = vmax.xlane.f32.xlu0 %v1330_v63 }
 0x36b   : > { %1337 = vmax.xlane.f32.xlu1 %v1336_v1 }
 0x36d   : > { %1334 = vmax.xlane.f32.xlu0 %v1333_v30 }
 0x36f   : > { %1343 = vmax.xlane.f32.xlu1 %v1342_v2 }
 0x371   : > { %1340 = vmax.xlane.f32.xlu0 %v1339_v3 }
 0x3bf   : > { %v1323_v12 = vpop.xlane.xlu1 %1322 }
 0x3c0   : > { %v1345_v10 = vsub.f32 %v992_v11, %v1323_v12 }
 0x3c1   : > { %v1326_v14 = vpop.xlane.xlu0 %1325 }
 0x3c2   : > { %v1353_v13 = vmul.f32 1.442695, %v1345_v10  ;;  %v1346_v29 = vsub.f32 %v1038_v32, %v1326_v14 }
 0x3c3   : > { %v748_v17 = vpop.permute.xlu1 %747 }
 0x3c4   : > { %2560 = vpow2.f32 %v1353_v13  ;;  %v1355_v25 = vmul.f32 1.442695, %v1346_v29  ;;  %v767_v15 = vcombine.low %v740_v6, %v748_v17 }
 0x3c5   : > { %v750_v22 = vpop.permute.xlu0 %749 }
 0x3c6   : > { %2562 = vpow2.f32 %v1355_v25  ;;  %v774_v38 = vrot.slane %v767_v15, %v2998_v20  ;;  %v801_v26 = vcombine.low %v742_v7, %v750_v22 }
 0x3c8   : > { %v775_v24 = vcombine.low %v766_v31, %v774_v38  ;;  %v776_v11 = vcombine.high %v766_v31, %v774_v38  ;;  %v808_v34 = vrot.slane %v801_v26, %v2998_v20 }
 0x3ca   : > { %v783_v32 = vrot.slane %v775_v24, %v3006_v28  ;;  %v790_v18 = vrot.slane %v776_v11, %v3006_v28  ;;  %v809_v27 = vcombine.low %v800_v16, %v808_v34  ;;  %v810_v35 = vcombine.high %v800_v16, %v808_v34 }
 0x3cc   : > { %v791_v33 = vcombine.high %v783_v32, %v2768_v40  ;;  %v792_v36 = vcombine.high %v790_v18, %v2768_v40  ;;  %v817_v39 = vrot.slane %v809_v27, %v3006_v28  ;;  %v824_v41 = vrot.slane %v810_v35, %v3006_v28 }
 0x3cd   : > { %v831_v44 = vshrl.u32 %v783_v32, 16  ;;  %v847_v46 = vshrl.u32 %v790_v18, 16 }
 0x3ce   : > { %v2561_v43 = vpop.eup %2560  ;;  %v839_v45 = vshrl.u32 %v791_v33, 16  ;;  %v825_v48 = vcombine.high %v817_v39, %v2768_v40  ;;  %v826_v49 = vcombine.high %v824_v41, %v2768_v40  ;;  %v829_v51 = vpack.i.b16 %v817_v39, %v783_v32 }
 0x3cf   : > { %v832_v52 = vshrl.u32 %v817_v39, 16  ;;  %v855_v54 = vshrl.u32 %v792_v36, 16  ;;  %v845_v56 = vpack.i.b16 %v824_v41, %v790_v18  ;;  %v848_v57 = vshrl.u32 %v824_v41, 16 }
 0x3d0   : > { %v2563_v53 = vpop.eup %2562  ;;  %v1369_v59 = vsel %vm1320_vm3, %v2561_v43, 0.0  ;;  %v837_v61 = vpack.i.b16 %v825_v48, %v791_v33  ;;  %v840_v62 = vshrl.u32 %v825_v48, 16  ;;  %v853_v23 = vpack.i.b16 %v826_v49, %v792_v36 }
 0x3d1   : > { %v833_v60 = vpack.i.b16 %v832_v52, %v831_v44  ;;  %1370 = vadd.xlane.f32.xlu0 %v1369_v59  ;;  %v849_v63 = vpack.i.b16 %v848_v57, %v847_v46  ;;  %v856_v1 = vshrl.u32 %v826_v49, 16  ;;  %v859_v30 = vcombine.low %v829_v51, %v845_v56 }
 0x3d2   : > { %v1372_v2 = vsel %vm1320_vm3, %v2563_v53, 0.0  ;;  %v841_v3 = vpack.i.b16 %v840_v62, %v839_v45  ;;  %v867_v4 = vcombine.low %v837_v61, %v853_v23  ;;  %v1393_v34 = vpack.c.bf16 %v2561_v43, %v2561_v43 }
 0x3d3   : > { %1373 = vadd.xlane.f32.xlu1 %v1372_v2  ;;  %v857_v5 = vpack.i.b16 %v856_v1, %v855_v54  ;;  %v893_v6 = vcombine.low %v833_v60, %v849_v63  ;;  %v866_v7 = vrot.slane %v859_v30, %v2998_v20  ;;  %v1394_v27 = vpack.c.bf16 %v2563_v53, %v2563_v53 }
 0x3d4   : > { %v874_v8 = vrot.slane %v867_v4, %v2998_v20 }
 0x3d5   : > { %v901_v9 = vcombine.low %v841_v3, %v857_v5  ;;  %v900_v10 = vrot.slane %v893_v6, %v2998_v20 }
 0x3d6   : > { %v875_v12 = vcombine.low %v866_v7, %v874_v8  ;;  %v876_v51 = vcombine.high %v866_v7, %v874_v8 }
 0x3d7   : > { %v908_v14 = vrot.slane %v901_v9, %v2998_v20 }
 0x3d8   : > { %v883_v19 = vrot.slane %v875_v12, %v3006_v28  ;;  %v890_v59 = vrot.slane %v876_v51, %v3006_v28 }
 0x3d9   : > { %v909_v13 = vcombine.low %v900_v10, %v908_v14  ;;  %v910_v45 = vcombine.high %v900_v10, %v908_v14 }
 0x3da   : > { %v891_v29 = vcombine.high %v883_v19, %v2768_v40  ;;  %v930_v25 = vshrl.u32 %v883_v19, 16  ;;  %v942_v63 = vshrl.u32 %v890_v59, 16  ;;  %v892_v6 = vcombine.high %v890_v59, %v2768_v40 }
 0x3db   : > { %v917_v17 = vrot.slane %v909_v13, %v3006_v28  ;;  %v924_v56 = vrot.slane %v910_v45, %v3006_v28 }
 0x3dc   : > { %v936_v31 = vshrl.u32 %v891_v29, 16 }
 0x3dd   : > { %v929_v21 = vpack.i.b16 %v917_v17, %v883_v19  ;;  %v931_v15 = vshrl.u32 %v917_v17, 16  ;;  %v925_v22 = vcombine.high %v917_v17, %v2768_v40  ;;  %v943_v61 = vshrl.u32 %v924_v56, 16 }
 0x3de   : > { %v941_v23 = vpack.i.b16 %v924_v56, %v890_v59  ;;  %v948_v19 = vshrl.u32 %v892_v6, 16 }
 0x3df   : > { %v1406_v38 = vsel %vm1404_vm4, %v929_v21, 0  ;;  %v932_v26 = vpack.i.b16 %v931_v15, %v930_v25  ;;  %v935_v16 = vpack.i.b16 %v925_v22, %v891_v29  ;;  %v937_v24 = vshrl.u32 %v925_v22, 16 }
 0x3e0   : > { %2411 = vmatpush3.bf16.msra.mxu1 %v1406_v38  ;;  %v944_v2 = vpack.i.b16 %v943_v61, %v942_v63  ;;  %v1590_v4 = vsel %vm1404_vm4, %v941_v23, 0 }
 0x3e1   : > { %v1452_v11 = vsel %vm1404_vm4, %v932_v26, 0  ;;  %2422 = vmatprep.subr.bf16.mxu1 %v2755_v0  ;;  %v938_v32 = vpack.i.b16 %v937_v24, %v936_v31  ;;  %v1498_v18 = vsel %vm1404_vm4, %v935_v16, 0 }
 0x3e2   : > { %2417 = vmatpush3.bf16.msra.mxu0 %v1452_v11  ;;  %v1636_v8 = vsel %vm1404_vm4, %v944_v2, 0 }
 0x3e3   : > { %2413 = vmatmul.mubr.msk.bf16.vlgmr.msra.gmra.mrb[16].mxu1 %vm1320_vm3, %v1393_v34  ;;  %2428 = vmatprep.subr.bf16.mxu0 %v2755_v0  ;;  %v1544_v35 = vsel %vm1404_vm4, %v938_v32, 0 }
 0x3e4   : > { %2423 = vmatpush3.bf16.msra.mxu1 %v1498_v18  ;;  %2424 = vmatprep.mubr.msk.bf16.mxu1 %vm2756_vm0, %v2755_v0 }
 0x3e5   : > { %2419 = vmatmul.mubr.msk.bf16.vlgmr.msra.gmra.mrb[20].mxu0 %vm1320_vm3, %v1394_v27  ;;  %2434 = vmatprep.subr.bf16.mxu1 %v2755_v0 }
 0x3e6   : > { %2429 = vmatpush3.bf16.msra.mxu0 %v1544_v35  ;;  %2430 = vmatprep.mubr.msk.bf16.mxu0 %vm2756_vm0, %v2755_v0 }
 0x3e7   : > { %2440 = vmatprep.subr.bf16.mxu0 %v2755_v0 }
 0x3f4   : > { %v1329_v33 = vpop.xlane.xlu1 %1328 }
 0x3f5   : > { %v1347_v36 = vsub.f32 %v3170_v37, %v1329_v33 }
 0x3f6   : > { %v1332_v39 = vpop.xlane.xlu0 %1331 }
 0x3f7   : > { %v1357_v41 = vmul.f32 1.442695, %v1347_v36  ;;  %v1348_v43 = vsub.f32 %v3172_v42, %v1332_v39 }
 0x3f8   : > { %v1338_v44 = vpop.xlane.xlu1 %1337 }
 0x3f9   : > { %2564 = vpow2.f32 %v1357_v41  ;;  %v1359_v46 = vmul.f32 1.442695, %v1348_v43  ;;  %v1350_v48 = vsub.f32 %v3176_v50, %v1338_v44 }
 0x3fa   : > { %v1335_v49 = vpop.xlane.xlu0 %1334 }
 0x3fb   : > { %2566 = vpow2.f32 %v1359_v46  ;;  %v1363_v52 = vmul.f32 1.442695, %v1350_v48  ;;  %v1349_v53 = vsub.f32 %v3174_v47, %v1335_v49 }
 0x3fc   : > { %v1344_v54 = vpop.xlane.xlu1 %1343 }
 0x3fd   : > { %2568 = vpow2.f32 %v1363_v52  ;;  %v1361_v37 = vmul.f32 1.442695, %v1349_v53  ;;  %v1352_v57 = vsub.f32 %v3184_v58, %v1344_v54  ;;  %v926_v58 = vcombine.high %v924_v56, %v2768_v40 }
 0x3fe   : > { %v1341_v42 = vpop.xlane.xlu0 %1340 }
 0x3ff   : > { %2570 = vpow2.f32 %v1361_v37  ;;  %v1367_v60 = vmul.f32 1.442695, %v1352_v57  ;;  %v1351_v50 = vsub.f32 %v3180_v55, %v1341_v42  ;;  %v949_v9 = vshrl.u32 %v926_v58, 16 }
 0x400   : > { %v947_v40 = vpack.i.b16 %v926_v58, %v892_v6 }
 0x401   : > { %v1365_v62 = vmul.f32 1.442695, %v1351_v50  ;;  %2572 = vpow2.f32 %v1367_v60  ;;  %v950_v17 = vpack.i.b16 %v949_v9, %v948_v19 }
 0x402   : > { %v1682_v25 = vsel %vm1404_vm4, %v947_v40, 0 }
 0x403   : > { %v2565_v47 = vpop.eup %2564  ;;  %2574 = vpow2.f32 %v1365_v62  ;;  %v1728_v38 = vsel %vm1404_vm4, %v950_v17, 0 }
 0x404   : > { %v1375_v1 = vsel %vm1320_vm3, %v2565_v47, 0.0  ;;  %v1395_v30 = vpack.c.bf16 %v2565_v47, %v2565_v47 }
 0x405   : > { %v2567_v3 = vpop.eup %2566  ;;  %1376 = vadd.xlane.f32.xlu0 %v1375_v1 }
 0x406   : > { %2425 = vmatmul.mubr.msk.bf16.vlgmr.msra.gmra.mrb[20].mxu1 %vm1320_vm3, %v1395_v30  ;;  %v1378_v55 = vsel %vm1320_vm3, %v2567_v3, 0.0  ;;  %v1396_v5 = vpack.c.bf16 %v2567_v3, %v2567_v3 }
 0x407   : > { %v2569_v7 = vpop.eup %2568  ;;  %2435 = vmatpush3.bf16.msra.mxu1 %v1590_v4  ;;  %1379 = vadd.xlane.f32.xlu1 %v1378_v55 }
 0x408   : > { %2431 = vmatmul.mubr.msk.bf16.vlgmr.msra.gmra.mrb[24].mxu0 %vm1320_vm3, %v1396_v5  ;;  %2436 = vmatprep.mubr.msk.bf16.mxu1 %vm2756_vm0, %v2755_v0  ;;  %v1384_v14 = vsel %vm1320_vm3, %v2569_v7, 0.0  ;;  %v1398_v22 = vpack.c.bf16 %v2569_v7, %v2569_v7 }
 0x409   : > { %v2571_v12 = vpop.eup %2570  ;;  %2441 = vmatpush3.bf16.msra.mxu0 %v1636_v8  ;;  %2446 = vmatprep.subr.bf16.mxu1 %v2755_v0 }
 0x40a   : > { %v1381_v10 = vsel %vm1320_vm3, %v2571_v12, 0.0  ;;  %2442 = vmatprep.mubr.msk.bf16.mxu0 %vm2756_vm0, %v2755_v0  ;;  %2452 = vmatprep.subr.bf16.mxu0 %v2755_v0  ;;  %v1397_v29 = vpack.c.bf16 %v2571_v12, %v2571_v12 }
 0x40b   : > { %1382 = vadd.xlane.f32.xlu0 %v1381_v10  ;;  %1385 = vadd.xlane.f32.xlu1 %v1384_v14  ;;  %v2573_v13 = vpop.eup %2572 }
 0x40c   : > { %v1390_v31 = vsel %vm1320_vm3, %v2573_v13, 0.0  ;;  %v1400_v16 = vpack.c.bf16 %v2573_v13, %v2573_v13 }
 0x40d   : > { %v2575_v21 = vpop.eup %2574 }
 0x40e   : > { %2437 = vmatmul.mubr.msk.bf16.vlgmr.msra.gmra.mrb[24].mxu1 %vm1320_vm3, %v1397_v29  ;;  %v1387_v15 = vsel %vm1320_vm3, %v2575_v21, 0.0  ;;  %v1399_v26 = vpack.c.bf16 %v2575_v21, %v2575_v21 }
 0x40f   : > { %2447 = vmatpush3.bf16.msra.mxu1 %v1682_v25  ;;  %1388 = vadd.xlane.f32.xlu0 %v1387_v15 }
 0x410   : > { %1391 = vadd.xlane.f32.xlu1 %v1390_v31  ;;  %2443 = vmatmul.mubr.msk.bf16.vlgmr.msra.gmra.mrb[28].mxu0 %vm1320_vm3, %v1398_v22 }
 0x411   : > { %2453 = vmatpush3.bf16.msra.mxu0 %v1728_v38  ;;  %2448 = vmatprep.mubr.msk.bf16.mxu1 %vm2756_vm0, %v2755_v0 }
 0x412   : > { %2454 = vmatprep.mubr.msk.bf16.mxu0 %vm2756_vm0, %v2755_v0  ;;  %2458 = vmatprep.subr.bf16.mxu1 %v2755_v0 }
 0x416   : > { %2449 = vmatmul.mubr.msk.bf16.vlgmr.msra.gmra.mrb[28].mxu1 %vm1320_vm3, %v1399_v26 }
 0x417   : > { %2462 = vmatprep.mubr.msk.bf16.mxu1 %vm2756_vm0, %v2755_v0 }
 0x418   : > { %2455 = vmatmul.mubr.msk.bf16.vlgmr.msra.gmra.mrb[32].mxu0 %vm1320_vm3, %v1400_v16 }
 0x45e   : > { %v1371_v36 = vpop.xlane.xlu0 %1370 }
 0x45f   : > { %2576 = vrcp.f32 %v1371_v36 }
 0x460   : > { %v1374_v39 = vpop.xlane.xlu1 %1373 }
 0x469   : > { %v2577_v45 = vpop.eup %2576 }
 0x492   : > { %v1377_v41 = vpop.xlane.xlu0 %1376 }
 0x493   : > { %2578 = vrcp.f32 %v1377_v41 }
 0x494   : > { %v1380_v43 = vpop.xlane.xlu1 %1379  ;;  %2580 = vrcp.f32 %v1374_v39 }
 0x495   : > { %2582 = vrcp.f32 %v1380_v43 }
 0x498   : > { %v1383_v44 = vpop.xlane.xlu0 %1382  ;;  %v1386_v46 = vpop.xlane.xlu1 %1385 }
 0x499   : > { %2584 = vrcp.f32 %v1383_v44 }
 0x49a   : > { %2586 = vrcp.f32 %v1386_v46 }
 0x49c   : > { %v1389_v52 = vpop.xlane.xlu0 %1388 }
 0x49d   : > { %v2579_v48 = vpop.eup %2578  ;;  %v1392_v47 = vpop.xlane.xlu1 %1391  ;;  %2588 = vrcp.f32 %v1389_v52 }
 0x49e   : > { %v2581_v51 = vpop.eup %2580  ;;  %2590 = vrcp.f32 %v1392_v47 }
 0x49f   : > { %v2583_v37 = vpop.eup %2582 }
 0x4a3   : > { %v2585_v16 = vpop.eup %2584 }
 0x4b6   : > { %v1442_v24 = vpop.f32.mrb[16].mxu1 }
 0x4b7   : > { %v2414_v11 = vpop.f32.mrb[17].mxu1  ;;  %v1778_v53 = vmul.f32 %v2577_v45, %v1442_v24  ;;  %v2587_v24 = vpop.eup %2586 }
 0x4b8   : > { %v1445_v34 = vpop.f32.mrb[18].mxu1  ;;  %v1488_v32 = vpop.f32.mrb[20].mxu0 }
 0x4b9   : > { %v2415_v18 = vpop.f32.mrb[19].mxu1  ;;  %v2420_v27 = vpop.f32.mrb[21].mxu0  ;;  %v1779_v59 = vmul.f32 %v2581_v51, %v1488_v32 }
 0x4ba   : > { %v1491_v35 = vpop.f32.mrb[22].mxu0  ;;  %v2589_v27 = vpop.eup %2588 }
 0x4bb   : > { %v2421_v33 = vpop.f32.mrb[23].mxu0  ;;  %v2591_v45 = vpop.eup %2590 }
 0x4d9   : > { %v1534_v49 = vpop.f32.mrb[20].mxu1 }
 0x4da   : > { %v1780_v54 = vmul.f32 %v2579_v48, %v1534_v49  ;;  %v2426_v56 = vpop.f32.mrb[21].mxu1 }
 0x4db   : > { %v1537_v57 = vpop.f32.mrb[22].mxu1  ;;  %v1580_v42 = vpop.f32.mrb[24].mxu0 }
 0x4dc   : > { %v1786_v60 = vcombine.low %v1778_v53, %v1780_v54  ;;  %v1787_v50 = vcombine.high %v1778_v53, %v1780_v54  ;;  %v1781_v61 = vmul.f32 %v2583_v37, %v1580_v42  ;;  %v2427_v62 = vpop.f32.mrb[23].mxu1  ;;  %v2432_v23 = vpop.f32.mrb[25].mxu0 }
 0x4dd   : > { %v1583_v63 = vpop.f32.mrb[26].mxu0 }
 0x4de   : > { %v1802_v1 = vcombine.low %v1779_v59, %v1781_v61  ;;  %v1803_v30 = vcombine.high %v1779_v59, %v1781_v61  ;;  %v2433_v2 = vpop.f32.mrb[27].mxu0  ;;  %v1794_v58 = vrot.slane %v1786_v60, %v2998_v20  ;;  %v1801_v3 = vrot.slane %v1787_v50, %v2998_v20 }
 0x4e0   : > { %v1810_v4 = vrot.slane %v1802_v1, %v2998_v20  ;;  %v1817_v55 = vrot.slane %v1803_v30, %v2998_v20 }
 0x4e1   : > { %v1626_v5 = vpop.f32.mrb[24].mxu1 }
 0x4e2   : > { %v1850_v6 = vcombine.low %v1794_v58, %v1810_v4  ;;  %v1851_v7 = vcombine.high %v1794_v58, %v1810_v4  ;;  %v1866_v8 = vcombine.low %v1801_v3, %v1817_v55  ;;  %v1867_v9 = vcombine.high %v1801_v3, %v1817_v55  ;;  %v2438_v12 = vpop.f32.mrb[25].mxu1 }
 0x4e3   : > { %v1629_v10 = vpop.f32.mrb[26].mxu1  ;;  %v1672_v14 = vpop.f32.mrb[28].mxu0  ;;  %v1782_v35 = vmul.f32 %v2585_v16, %v1626_v5 }
 0x4e4   : > { %v1858_v40 = vrot.slane %v1850_v6, %v3006_v28  ;;  %v1865_v19 = vrot.slane %v1851_v7, %v3006_v28  ;;  %v1874_v13 = vrot.slane %v1866_v8, %v3006_v28  ;;  %v1881_v29 = vrot.slane %v1867_v9, %v3006_v28  ;;  %v2439_v17 = vpop.f32.mrb[27].mxu1  ;;  %v2444_v21 = vpop.f32.mrb[29].mxu0  ;;  %v2558_v8 = vld [vmem:[#allocation7] sm:$0xff]  }
 0x4e5   : > { %v1675_v25 = vpop.f32.mrb[30].mxu0  ;;  %v1783_v46 = vmul.f32 %v2587_v24, %v1672_v14  ;;  %2459 = vmatpush3.bf16.msra.mxu1 %v2558_v8 }
 0x4e6   : > { %v2300_v15 = vcombine.low %v1858_v40, %v1865_v19  ;;  %v2302_v22 = vcombine.high %v1858_v40, %v1865_v19  ;;  %v2304_v31 = vcombine.low %v1874_v13, %v1881_v29  ;;  %v2306_v38 = vcombine.high %v1874_v13, %v1881_v29  ;;  %v2445_v26 = vpop.f32.mrb[31].mxu0  ;;  %2460 = vmatprep.subr.bf16.mxu1 %v2755_v0 }
 0x4e8   : > { %v1930_v11 = vrot.slane %v2300_v15, %v2998_v20  ;;  %v1946_v34 = vrot.slane %v2302_v22, %v2998_v20  ;;  %v1962_v32 = vrot.slane %v2304_v31, %v2998_v20  ;;  %v1978_v18 = vrot.slane %v2306_v38, %v2998_v20  ;;  %v2559_v22 = vld [vmem:[#allocation7 + $0x8] sm:$0xff]  }
 0x4e9   : > { %v1718_v33 = vpop.f32.mrb[28].mxu1  ;;  %2461 = vmatpush3.bf16.msra.mxu1 %v2559_v22 }
 0x4ea   : > { %v1784_v36 = vmul.f32 %v2589_v27, %v1718_v33  ;;  %v2450_v39 = vpop.f32.mrb[29].mxu1  ;;  %v1987_v41 = vcombine.high %v1930_v11, %v1946_v34  ;;  %v2019_v43 = vcombine.high %v1962_v32, %v1978_v18  ;;  %v1986_v44 = vcombine.low %v1930_v11, %v1946_v34 }
 0x4eb   : > { %v1721_v48 = vpop.f32.mrb[30].mxu1  ;;  %v1764_v49 = vpop.f32.mrb[32].mxu0  ;;  %v2018_v51 = vcombine.low %v1962_v32, %v1978_v18 }
 0x4ec   : > { %v1818_v52 = vcombine.low %v1782_v35, %v1784_v36  ;;  %v1819_v53 = vcombine.high %v1782_v35, %v1784_v36  ;;  %v1785_v54 = vmul.f32 %v2591_v45, %v1764_v49  ;;  %v2451_v56 = vpop.f32.mrb[31].mxu1  ;;  %v2456_v37 = vpop.f32.mrb[33].mxu0  ;;  %v2001_v57 = vrot.slane %v1987_v41, %v3006_v28 }
 0x4ed   : > { %v1767_v42 = vpop.f32.mrb[34].mxu0  ;;  %v2033_v59 = vrot.slane %v2019_v43, %v3006_v28  ;;  %v3288_v60 = vrot.slane %v1986_v44, %v3006_v28  ;;  %v3291_v50 = vrot.slane %v2018_v51, %v3006_v28 }
 0x4ee   : > { %v1834_v61 = vcombine.low %v1783_v46, %v1785_v54  ;;  %v1835_v62 = vcombine.high %v1783_v46, %v1785_v54  ;;  %v2457_v23 = vpop.f32.mrb[35].mxu0  ;;  %v1826_v2 = vrot.slane %v1818_v52, %v2998_v20  ;;  %v1833_v58 = vrot.slane %v1819_v53, %v2998_v20  ;;  %v2308_v54 = vld [vmem:[%s3373_s3] ss:$0 sm:$0xff] }
 0x4ef   : > { %v2052_v63 = vcombine.low %v2001_v57, %v2033_v59  ;;  %v2051_v47 = vcombine.high %v3288_v60, %v3291_v50  ;;  %v2053_v1 = vcombine.high %v2001_v57, %v2033_v59  ;;  %v2050_v30 = vcombine.low %v3288_v60, %v3291_v50 }
 0x4f0   : > { %v1842_v3 = vrot.slane %v1834_v61, %v2998_v20  ;;  %v1849_v4 = vrot.slane %v1835_v62, %v2998_v20 }
 0x4f1   : > { %2063 = vrot.lane.b32.xlu1 %v2052_v63, %s2769_s20  ;;  %2059 = vrot.lane.b32.xlu0 %v2051_v47, %s2770_s28  ;;  %s2678_s20 = scalar_lea.vmem %s3327_s6, 128  ;;  %s2776_s28 = smov [#allocation8]  }
 0x4f2   : > { %v1882_v55 = vcombine.low %v1826_v2, %v1842_v3  ;;  %v1883_v5 = vcombine.high %v1826_v2, %v1842_v3  ;;  %v1898_v6 = vcombine.low %v1833_v58, %v1849_v4  ;;  %v1899_v7 = vcombine.high %v1833_v58, %v1849_v4  ;;  %p2679_p8 = scmp.ne.s32.totalorder %s3327_s6, %s2678_s20 }
 0x4f4   : > { %v1890_v9 = vrot.slane %v1882_v55, %v3006_v28  ;;  %v1897_v12 = vrot.slane %v1883_v5, %v3006_v28  ;;  %v1906_v10 = vrot.slane %v1898_v6, %v3006_v28  ;;  %v1913_v14 = vrot.slane %v1899_v7, %v3006_v28  ;;  %p2680_p1 = pnand %p2679_p8, %p3388_p0 }
 0x4f5   : > { %2067 = vrot.lane.b32.xlu1 %v2053_v1, %s2771_s11  ;;  %s2682_s11 = sshll.u32 %s2776_s28, 4  ;;  %s2683_s11 = int_to_ptr.vmem [resolvable:$false] %s2682_s11 }
 0x4f6   : > { %v2301_v40 = vcombine.low %v1890_v9, %v1897_v12  ;;  %v2303_v19 = vcombine.high %v1890_v9, %v1897_v12  ;;  %v2305_v13 = vcombine.low %v1906_v10, %v1913_v14  ;;  %v2307_v29 = vcombine.high %v1906_v10, %v1913_v14  ;;  %p2681_p3 = pneg %p2680_p1  ;;  %p2685_p7 = scmp.lt.s32.totalorder %s3327_s6, %s2683_s11 }
 0x4f8   : > { %v1937_v17 = vrot.slane %v2301_v40, %v2998_v20  ;;  %v1953_v21 = vrot.slane %v2303_v19, %v2998_v20  ;;  %v1969_v25 = vrot.slane %v2305_v13, %v2998_v20  ;;  %v1985_v15 = vrot.slane %v2307_v29, %v2998_v20 }
 0x4fa   : > { %v2002_v31 = vcombine.low %v1937_v17, %v1953_v21  ;;  %v2034_v38 = vcombine.low %v1969_v25, %v1985_v15  ;;  %v2003_v26 = vcombine.high %v1937_v17, %v1953_v21  ;;  %v2035_v16 = vcombine.high %v1969_v25, %v1985_v15 }
 0x4fc   : > { %v2010_v24 = vrot.slane %v2002_v31, %v3006_v28  ;;  %v2042_v11 = vrot.slane %v2034_v38, %v3006_v28  ;;  %v2017_v0 = vrot.slane %v2003_v26, %v3006_v28  ;;  %v2049_v34 = vrot.slane %v2035_v16, %v3006_v28 }
 0x4fe   : > { %v2055_v32 = vcombine.high %v2010_v24, %v2042_v11  ;;  %v2054_v18 = vcombine.low %v2010_v24, %v2042_v11  ;;  %v2057_v27 = vcombine.high %v2017_v0, %v2049_v34  ;;  %v2056_v35 = vcombine.low %v2017_v0, %v2049_v34 }
 0x500   : > { %2075 = vrot.lane.b32.xlu1 %v2055_v32, %s2772_s12  ;;  %2071 = vrot.lane.b32.xlu0 %v2054_v18, %s2773_s25  ;;  %s2684_s12 = scalar_lea.vmem %s2683_s11, 256 }
 0x501   : > { %p2686_p9 = scmp.lt.s32.totalorder %s2684_s12, %s2678_s20 }
 0x503   : > { %p2687_p12 = por %p2686_p9, %p2685_p7 }
 0x504   : > { %2083 = vrot.lane.b32.xlu1 %v2057_v27, %s2774_s7  ;;  %2079 = vrot.lane.b32.xlu0 %v2056_v35, %s2775_s8 }
 0x505   : > { %p2688_p2 = pnand %p2687_p12, %p2681_p3 }
 0x563   : > { %v2064_v20 = vpop.permute.xlu1 %2063  ;;  %v2060_v33 = vpop.permute.xlu0 %2059 }
 0x564   : > { %v2086_v36 = vsel %vm951_vm2, %v2050_v30, %v2060_v33 }
 0x565   : > { %v2087_v28 = vsel %vm1320_vm3, %v2086_v36, %v2064_v20 }
 0x567   : > { %v2068_v39 = vpop.permute.xlu1 %2067 }
 0x568   : > { %v2089_v41 = vsel %vm2088_vm5, %v2087_v28, %v2068_v39 }
 0x572   : > { %v2076_v43 = vpop.permute.xlu1 %2075  ;;  %v2072_v44 = vpop.permute.xlu0 %2071 }
 0x573   : > { %v2091_v45 = vsel %vm2090_vm6, %v2089_v41, %v2072_v44 }
 0x574   : > { %v2093_v48 = vsel %vm2092_vm7, %v2091_v45, %v2076_v43 }
 0x576   : > { %v2084_v46 = vpop.permute.xlu1 %2083  ;;  %v2080_v49 = vpop.permute.xlu0 %2079 }
 0x577   : > { %v2095_v51 = vsel %vm2094_vm8, %v2093_v48, %v2080_v49 }
 0x578   : > { %v2097_v52 = vsel %vm2096_vm9, %v2095_v51, %v2084_v46 }
 0x579   : > { %v2098_v53 = vpack.c.bf16 %v2097_v52, %v2097_v52 }
 0x57b   : > { %2463 = vmatmul.mubr.msk.bf16.vlgmr.msra.gmra.mrb[32].mxu1 %vm260_vm1, %v2098_v53 }
 0x64e   : > { %v2159_v56 = vpop.f32.mrb[32].mxu1 }
 0x64f   : > { %v2160_v37 = vadd.f32 %v2308_v54, %v2159_v56  ;;  %v2464_v57 = vpop.f32.mrb[33].mxu1 }
 0x650   : > { %v2162_v42 = vpop.f32.mrb[34].mxu1 }
 0x651   : > { %v2465_v59 = vpop.f32.mrb[35].mxu1  ;;  %2165 = vst.msk [vmem:[%s241_s5] sm:$0xff] %vm260_vm1, %v2160_v37 }
 0x652   : > { %2691 = shalt.err (!%p2688_p2)
}
 0x653   : > { %s2692_s29 = scalar_lea.hbm %s3325_s24, 128  ;;  %s2696_s8 = scalar_lea.hbm %s3374_s4, 256 }
 0x654   : > { %p2693_p13 = scmp.ne.s32.totalorder %s3325_s24, %s2692_s29  ;;  %p2697_p4 = scmp.lt.u32.totalorder %s3325_s24, %s3374_s4 }
 0x655   : > { %p2698_p5 = scmp.lt.u32.totalorder %s2696_s8, %s2692_s29  ;;  %p2700_p8 = scmp.lt.u32.totalorder %s2692_s29, %s3325_s24 }
 0x656   : > { %p2694_p6 = pnand %p2693_p13, %p3388_p0 }
 0x657   : > { %p2699_p11 = por %p2698_p5, %p2697_p4 }
 0x658   : > { %p2695_p10 = pneg %p2694_p6 }
 0x659   : > { %p2701_p1 = por %p2700_p8, %p2699_p11 }
 0x65b   : > { %p2702_p3 = pnand %p2701_p1, %p2695_p10 }
 0x65d   : > { %2705 = shalt.err (!%p2702_p3)
}
 0x65e   : > { %2476 = dma.vmem_to_hbm [thread:$0]  (%p3388_p0), %s3327_s6, 128, %s3325_s24, %s2167_s19  }
 0x65f PF: > { %s2192_s27 = sand.u32 1, %s2736_s15   ;;  %p3389_p7 = scmp.ne.s32.totalorder %s3379_s22, 0 }
 0x660   : > { %p3390_p9 = scmp.ge.s32.totalorder %s2748_s18, 2  ;;  %s2193_s30 = scalar_lea.sflag [#allocation4], %s2192_s27 }
 0x662   : > { %p2490_p12 = pnand %p3390_p9, %p3389_p7 }
 0x664   : > { %2731 = dma.done.wait (!%p2490_p12), %s2193_s30, 128  }
 0x665   : > { %2733 = vsyncadd (!%p2490_p12), %s2193_s30, 4294967168  ;;  %p18_p2 = scmp.ge.s32.totalorder %s2912_s9, 4   ;;  %s3391_s15 = smov %s2740_s16 }
 0x666   : > { %s3392_s16 = smov %s2744_s17  ;;  %s3393_s17 = smov %s2928_s14 }
 0x667   : > { %s3394_s18 = smov %s2912_s9  ;;  %20 = sbr.rel (!%p18_p2) target bundleno = 6 (0x6), region = 89 }
 0x66e   :  { %2198 = vsyncpa [#allocation3], 1 }
 0x66f   :  { %2200 = vsyncpa [#allocation3 + $0x1], 1 }
 0x670   :  { %2201 = vsyncpa [#allocation6], 1 }
 0x671   :  { %2202 = vsyncpa [#allocation4], 1 }
 0x672   :  { %2204 = vsyncpa [#allocation4 + $0x1], 1 }

// kernel: tpu_custom_call.1
= control target key start
LH: loop header
LB: loop body
LE: loop exit
PB: predicated region body
PF: predicated region fallthrough
CT: control target
= control target key end

     0   :  { %9 = vsyncpa [#allocation3], 0  ;;  %s3370_s0 = inlined_call_operand.hbm [shape: bf16[2,8,32], index: 0, kind: input, shape index: {}]   ;;  %s3371_s1 = inlined_call_operand.hbm [shape: bf16[32,96], index: 1, kind: input, shape index: {}]   ;;  %s3372_s2 = inlined_call_operand.hbm [shape: bf16[32,32], index: 2, kind: input, shape index: {}]   ;;  %s3373_s3 = inlined_call_operand.vmem [shape: f32[1,32], index: 3, kind: input, shape index: {}]   ;;  %s3374_s4 = inlined_call_operand.hbm [shape: f32[2,8,32], index: 4, kind: output, shape index: {}]  }
   0x1   :  { %11 = vsyncpa [#allocation3 + $0x1], 0 }
   0x2   :  { %12 = vsyncpa [#allocation6], 0 }
   0x3   :  { %13 = vsyncpa [#allocation4], 0 }
   0x4   :  { %15 = vsyncpa [#allocation4 + $0x1], 0  ;;  %s2802_s15 = smov 0   ;;  %s2804_s16 = smov 0  }
   0x5   :  { %s2806_s17 = smov 0   ;;  %s2808_s18 = smov 0  }
   0x6 LB: > { %s2823_s19 = sadd.s32 4294967295, %s2748_s18   ;;  %s2269_s20 = sadd.s32 4294967294, %s2748_s18   ;;  %s2748_s18 = sphi %s2808_s18, %s3394_s18   ;;  %s2744_s17 = sphi %s2806_s17, %s3393_s17   ;;  %s2740_s16 = sphi %s2804_s16, %s3392_s16   ;;  %s2736_s15 = sphi %s2802_s15, %s3391_s15  }
   0x7   : > { %p41_p0 = scmp.ne.s32.totalorder %s2740_s16, %s2736_s15  ;;  %p3375_p1 = scmp.eq.s32.totalorder %s2823_s19, 0 }
   0x8   : > { %p134_p3 = scmp.eq.s32.totalorder %s2269_s20, 1  ;;  %p2270_p5 = scmp.ge.s32.totalorder %s2748_s18, 1 }
   0x9   : > { %p2832_p4 = por %p3375_p1, %p41_p0  ;;  %p141_p7 = scmp.lt.s32.totalorder %s2748_s18, 3 }
   0xa   : > { %p2837_p6 = por %p134_p3, %p41_p0  ;;  %s2750_s24 = smov [#allocation5]  }
   0xb   : > { %s3378_s21 = scalar_select %p2832_p4, 1, 0 }
   0xc   : > { %s3379_s22 = scalar_select %p2837_p6, 1, 0 }
   0xd   : > { %p2842_p8 = pnand %p2270_p5, %p141_p7  ;;  %s153_s25 = sshll.u32 %s2750_s24, 4  ;;  %s2846_s25 = int_to_ptr.vmem [resolvable:$true] %s153_s25 }
   0xe   : > { %s2751_s27 = smov [#allocation7]   ;;  %s2592_s5 = scalar_lea.hbm %s3371_s1, 256 }
   0xf   : > { %p2478_p9 = pneg %p2842_p8  ;;  %s166_s28 = sshll.u32 %s2751_s27, 4  ;;  %s2857_s28 = int_to_ptr.vmem [resolvable:$true] %s166_s28 }
  0x10   : > { %p2593_p12 = scmp.ne.s32.totalorder %s3371_s1, %s2592_s5  ;;  %p2599_p5 = scmp.lt.u32.totalorder %s2592_s5, %s3371_s1 }
  0x11   : > { %p2853_p11 = pnand %p2478_p9, %p3375_p1 }
  0x13   : > { %p2594_p13 = pneg %p2853_p11 }
  0x15   : > { %p2595_p0 = pnand %p2594_p13, %p2593_p12 }
  0x17   : > { %p2596_p3 = pneg %p2595_p0 }
  0x19   : > { %p2601_p7 = pnand %p2599_p5, %p2596_p3 }
  0x1b   : > { %2604 = shalt.err (!%p2601_p7)
}
  0x1c   : > { %s2605_s10 = scalar_lea.vmem %s2846_s25, 256  ;;  %p2613_p2 = scmp.lt.s32.totalorder %s2846_s25, %s2846_s25 }
  0x1d   : > { %p2606_p9 = scmp.ne.s32.totalorder %s2846_s25, %s2605_s10  ;;  %p2614_p12 = scmp.lt.s32.totalorder %s2605_s10, %s2605_s10 }
  0x1f   : > { %p2608_p10 = pnand %p2606_p9, %p2594_p13  ;;  %p2615_p0 = por %p2614_p12, %p2613_p2 }
  0x21   : > { %p2609_p1 = pneg %p2608_p10 }
  0x23   : > { %p2616_p6 = pnand %p2615_p0, %p2609_p1 }
  0x25   : > { %2619 = shalt.err (!%p2616_p6)
}
  0x26   : > { %s2752_s11 = smov 64   ;;  %s2753_s12 = smov 4  }
  0x27   : > { %2481 = dma.hbm_to_vmem [thread:$0]  (!%p2853_p11), %s3371_s1, 256, %s2846_s25, [#allocation6], %s2752_s11, %s2752_s11, %s2753_s12  }
  0x28   : > { %s2620_s27 = scalar_lea.hbm %s3372_s2, 256 }
  0x29   : > { %p2621_p2 = scmp.ne.s32.totalorder %s3372_s2, %s2620_s27  ;;  %p2627_p10 = scmp.lt.u32.totalorder %s2620_s27, %s3372_s2 }
  0x2b   : > { %p2623_p1 = pnand %p2621_p2, %p2594_p13 }
  0x2d   : > { %p2624_p6 = pneg %p2623_p1 }
  0x2f   : > { %p2629_p3 = pnand %p2627_p10, %p2624_p6 }
  0x31   : > { %2632 = shalt.err (!%p2629_p3)
}
  0x32   : > { %s2633_s25 = scalar_lea.vmem %s2857_s28, 256  ;;  %p2641_p12 = scmp.lt.s32.totalorder %s2857_s28, %s2857_s28 }
  0x33   : > { %p2634_p5 = scmp.ne.s32.totalorder %s2857_s28, %s2633_s25  ;;  %p2642_p0 = scmp.lt.s32.totalorder %s2633_s25, %s2633_s25 }
  0x35   : > { %p2636_p7 = pnand %p2634_p5, %p2594_p13  ;;  %p2643_p2 = por %p2642_p0, %p2641_p12 }
  0x37   : > { %p2637_p9 = pneg %p2636_p7 }
  0x39   : > { %p2644_p1 = pnand %p2643_p2, %p2637_p9 }
  0x3b   : > { %2647 = shalt.err (!%p2644_p1)
}
  0x3c   : > { %2484 = dma.hbm_to_vmem [thread:$0]  (!%p2853_p11), %s3372_s2, 256, %s2857_s28, [#allocation6], %s2752_s11, %s2752_s11, %s2753_s12  }
  0x3d   : > { %s2912_s9 = sadd.s32 1, %s2748_s18   ;;  %s28_s26 = sadd.s32 1, %s2744_s17 }
  0x3e   : > { %s25_s10 = ssub.s32 %s2748_s18, %s2912_s9  ;;  %p35_p13 = scmp.ne.s32.totalorder %s2744_s17, %s2740_s16 }
  0x3f   : > { %p26_p6 = scmp.eq.s32.totalorder %s25_s10, 0  ;;  %p36_p10 = scmp.eq.s32.totalorder %s2748_s18, 0 }
  0x40   : > { %p3382_p3 = scmp.eq.s32.totalorder %s2823_s19, 1  ;;  %p2495_p7 = scmp.lt.s32.totalorder %s2748_s18, 2 }
  0x41   : > { %s2928_s14 = scalar_select %p26_p6, %s2744_s17, %s28_s26  }
  0x42   : > { %p2922_p5 = por %p3382_p3, %p35_p13  ;;  %p37_p9 = por %p36_p10, %p35_p13 }
  0x43   : > { %s183_s20 = sand.u32 1, %s2744_s17   ;;  %s2275_s28 = sshll.u32 %s2748_s18, 6 }
  0x44   : > { %s3383_s13 = scalar_select %p2922_p5, 1, 0 }
  0x45   : > { %s2274_s24 = sshll.u32 %s183_s20, 2  ;;  %s2935_s27 = scalar_lea.hbm %s3370_s0, %s2275_s28 }
  0x46   : > { %s187_s29 = scalar_lea.vmem [#allocation2], %s2274_s24  ;;  %p2939_p11 = pnand %p2495_p7, %p37_p9 }
  0x47   : > { %s194_s30 = sshll.u32 %s187_s29, 4  ;;  %s184_s6 = scalar_lea.sflag [#allocation3], %s183_s20  ;;  %s2937_s30 = int_to_ptr.vmem [resolvable:$true] %s194_s30 }
  0x48   : > { %s2648_s25 = scalar_lea.hbm %s2935_s27, 64  ;;  %p2650_p0 = pneg %p2939_p11 }
  0x49   : > { %p2649_p12 = scmp.ne.s32.totalorder %s2935_s27, %s2648_s25  ;;  %s2653_s26 = scalar_lea.hbm %s3370_s0, 128 }
  0x4a   : > { %p2654_p13 = scmp.lt.u32.totalorder %s2935_s27, %s3370_s0  ;;  %p2655_p6 = scmp.lt.u32.totalorder %s2653_s26, %s2648_s25 }
  0x4b   : > { %p2651_p2 = pnand %p2650_p0, %p2649_p12  ;;  %p2657_p3 = scmp.lt.u32.totalorder %s2648_s25, %s2935_s27 }
  0x4c   : > { %p2656_p10 = por %p2655_p6, %p2654_p13 }
  0x4d   : > { %p2652_p1 = pneg %p2651_p2 }
  0x4e   : > { %p2658_p7 = por %p2657_p3, %p2656_p10 }
  0x50   : > { %p2659_p9 = pnand %p2658_p7, %p2652_p1 }
  0x52   : > { %2662 = shalt.err (!%p2659_p9)
}
  0x53   : > { %s2663_s20 = scalar_lea.vmem %s2937_s30, 64  ;;  %s2754_s28 = smov [#allocation2]  }
  0x54   : > { %p2664_p12 = scmp.ne.s32.totalorder %s2937_s30, %s2663_s20  ;;  %s2668_s11 = sshll.u32 %s2754_s28, 4  ;;  %s2669_s11 = int_to_ptr.vmem [resolvable:$false] %s2668_s11 }
  0x55   : > { %s2670_s12 = scalar_lea.vmem %s2669_s11, 128  ;;  %p2671_p4 = scmp.lt.s32.totalorder %s2937_s30, %s2669_s11 }
  0x56   : > { %p2666_p2 = pnand %p2664_p12, %p2650_p0  ;;  %p2672_p13 = scmp.lt.s32.totalorder %s2670_s12, %s2663_s20 }
  0x58   : > { %p2667_p5 = pneg %p2666_p2  ;;  %p2673_p6 = por %p2672_p13, %p2671_p4 }
  0x5a   : > { %p2674_p10 = pnand %p2673_p6, %p2667_p5 }
  0x5c   : > { %2677 = shalt.err (!%p2674_p10)
}
  0x5d   : > { %2488 = dma.hbm_to_vmem [thread:$0]  (!%p2939_p11), %s2935_s27, 64, %s2937_s30, %s184_s6  }
  0x5e   : > { %203 = sbr.rel (%p2842_p8) target bundleno = 1631 (0x65f), region = 36  ;;  %s2971_s29 = sand.u32 (!%p2842_p8), 1, %s2740_s16  }
  0x5f   : > { %s2277_s25 = sshll.u32 (!%p2842_p8), %s2971_s29, 2  ;;  %s206_s7 = scalar_lea.sflag (!%p2842_p8), [#allocation3], %s2971_s29 }
  0x60   : > { %s209_s8 = scalar_lea.vmem (!%p2842_p8), [#allocation2], %s2277_s25  ;;  %p3385_p4 = scmp.ne.s32.totalorder (!%p2842_p8), %s3378_s21, 0 }
  0x65   : > { %2723 = dma.done.wait (%p3385_p4), %s206_s7, 64  }
  0x66   : > { %2725 = vsyncadd (%p3385_p4), %s206_s7, 4294967232  ;;  %p3386_p5 = scmp.eq.s32.totalorder %s2823_s19, 0 }
  0x68   : > { %2727 = dma.done.wait (%p3386_p5), [#allocation6], 512   ;;  %p3387_p11 = pmov %p3386_p5 }
  0x69   : > { %v2755_v0 = vmov 0.0   ;;  %vm2756_vm0 = vmmov 0   ;;  %v2556_v1 = vld [vmem:[#allocation5] sm:$0xff]   ;;  %v2557_v2 = vld [vmem:[#allocation5 + $0x8] sm:$0xff]   ;;  %v243_v3 = vld [vmem:[%s209_s8] sm:$0xf]  ;;  %v331_v11 = vlaneseq }
  0x6a   : > { %2729 = vsyncadd (%p3387_p11), [#allocation6], 4294966784  ;;  %2354 = vmatprep.subr.bf16.mxu0 %v2755_v0  ;;  %2358 = vmatprep.mubr.msk.bf16.mxu0 %vm2756_vm0, %v2755_v0  ;;  %vm260_vm1 = vcmask 261120   ;;  %s2757_s21 = smov 116   ;;  %s2758_s23 = smov 124   ;;  %v2768_v40 = vmov 0  }
  0x6b   : > { %2362 = vmatprep.subr.bf16.mxu1 %v2755_v0  ;;  %2364 = vmatprep.mubr.msk.bf16.mxu1 %vm2756_vm0, %v2755_v0  ;;  %s2759_s27 = smov 112   ;;  %s2760_s30 = smov 120   ;;  %v2765_v9 = vmov 1983009808   ;;  %v332_v15 = vshrl.u32 %v331_v11, 7  ;;  %vm951_vm2 = vcmask 31744  }
  0x6c   : > { %2355 = vmatpush3.bf16.msra.mxu0 %v2556_v1  ;;  %s2761_s5 = smov 104   ;;  %s2762_s6 = smov 108   ;;  %v329_v10 = vunpack.c.l.s4 %v2765_v9  ;;  %v2766_v16 = vmov 1934713408   ;;  %vm1320_vm3 = vcmask 64512   ;;  %vm1404_vm4 = vcmask 1043456  }
  0x6d   : > { %2356 = vmatprep.subr.bf16.mxu0 %v2755_v0  ;;  %s2763_s26 = smov 96   ;;  %s2764_s10 = smov 100   ;;  %v346_v17 = vunpack.c.l.s4 %v2766_v16  ;;  %vm2088_vm5 = vcmask 97280   ;;  %vm2090_vm6 = vcmask 130048   ;;  %vm2092_vm7 = vcmask 162816  }
  0x6e   : > { %v330_v14 = vunpack.c.0.s8 %v329_v10  ;;  %s2767_s24 = smov 64   ;;  %s2769_s20 = smov 8   ;;  %vm2094_vm8 = vcmask 195584   ;;  %vm2096_vm9 = vcmask 228352  }
  0x6f   : > { %v347_v22 = vunpack.c.0.s8 %v346_v17  ;;  %s2770_s28 = smov 4   ;;  %s2771_s11 = smov 12  }
  0x70   : > { %2357 = vmatpush3.bf16.msra.mxu0 %v2557_v2  ;;  %v2998_v20 = vsub.s32 %v330_v14, %v332_v15  ;;  %s2772_s12 = smov 20   ;;  %s2773_s25 = smov 16  }
  0x71   : > { %2368 = vmatprep.subr.bf16.mxu0 %v2755_v0  ;;  %v3006_v28 = vsub.s32 %v347_v22, %v332_v15  ;;  %s2774_s7 = smov 28   ;;  %s2775_s8 = smov 24  }
  0x72   : > { %p3388_p0 = scmp.ne.s32.totalorder %s3383_s13, 0 }
  0x73   : > { %2359 = vmatmul.mubr.msk.bf16.vlgmr.msra.gmra.mrb[0].mxu0 %vm260_vm1, %v243_v3 }
  0x74   : > { %2370 = vmatprep.mubr.msk.bf16.mxu0 %vm2756_vm0, %v2755_v0 }
 0x146   : > { %v298_v4 = vpop.f32.mrb[0].mxu0 }
 0x147   : > { %v304_v5 = vpack.c.bf16 %v298_v4, %v298_v4  ;;  %v2360_v6 = vpop.f32.mrb[1].mxu0 }
 0x148   : > { %v301_v7 = vpop.f32.mrb[2].mxu0 }
 0x149   : > { %312 = vrot.lane.b32.xlu1 %v304_v5, %s2757_s21  ;;  %306 = vrot.lane.b32.xlu0 %v304_v5, %s2758_s23  ;;  %v2361_v8 = vpop.f32.mrb[3].mxu0  ;;  %s2280_s21 = sshll.u32 %s2971_s29, 3 }
 0x14d   : > { %315 = vrot.lane.b32.xlu1 %v304_v5, %s2759_s27  ;;  %309 = vrot.lane.b32.xlu0 %v304_v5, %s2760_s30  ;;  %s2313_s30 = sshll.u32 %s2823_s19, 7  ;;  %s2167_s19 = scalar_lea.sflag [#allocation4], %s2971_s29 }
 0x151   : > { %321 = vrot.lane.b32.xlu1 %v304_v5, %s2761_s5  ;;  %318 = vrot.lane.b32.xlu0 %v304_v5, %s2762_s6  ;;  %s241_s5 = scalar_lea.vmem [#allocation8], %s2280_s21 }
 0x152   : > { %s2180_s6 = sshll.u32 %s241_s5, 4  ;;  %s3327_s6 = int_to_ptr.vmem [resolvable:$true] %s2180_s6 }
 0x155   : > { %519 = vrot.lane.b32.xlu1 %v304_v5, %s2763_s26  ;;  %324 = vrot.lane.b32.xlu0 %v304_v5, %s2764_s10 }
 0x1bb   : > { %v313_v12 = vpop.permute.xlu1 %312  ;;  %v307_v13 = vpop.permute.xlu0 %306 }
 0x1bc   : > { %521 = vrot.lane.b32.xlu0 %v307_v13, %s2763_s26 }
 0x1bf   : > { %v316_v18 = vpop.permute.xlu1 %315  ;;  %v310_v19 = vpop.permute.xlu0 %309 }
 0x1c0   : > { %525 = vrot.lane.b32.xlu0 %v313_v12, %s2763_s26  ;;  %523 = vrot.lane.b32.xlu1 %v310_v19, %s2763_s26  ;;  %v327_v21 = vcombine.low %v304_v5, %v316_v18 }
 0x1c2   : > { %v334_v27 = vrot.slane %v327_v21, %v2998_v20 }
 0x1c3   : > { %v3000_v23 = vpop.permute.xlu1 %321  ;;  %v319_v24 = vpop.permute.xlu0 %318 }
 0x1c4   : > { %v335_v25 = vcombine.low %v310_v19, %v3000_v23  ;;  %v361_v26 = vcombine.low %v307_v13, %v319_v24  ;;  %527 = vrot.lane.b32.xlu1 %v316_v18, %s2763_s26  ;;  %529 = vrot.lane.b32.xlu0 %v319_v24, %s2763_s26 }
 0x1c6   : > { %v342_v29 = vrot.slane %v335_v25, %v2998_v20  ;;  %v368_v36 = vrot.slane %v361_v26, %v2998_v20 }
 0x1c7   : > { %v3009_v30 = vpop.permute.xlu0 %324 }
 0x1c8   : > { %v343_v31 = vcombine.low %v334_v27, %v342_v29  ;;  %v344_v32 = vcombine.high %v334_v27, %v342_v29  ;;  %v369_v33 = vcombine.low %v313_v12, %v3009_v30  ;;  %531 = vrot.lane.b32.xlu1 %v3000_v23, %s2763_s26  ;;  %533 = vrot.lane.b32.xlu0 %v3009_v30, %s2763_s26 }
 0x1ca   : > { %v351_v34 = vrot.slane %v343_v31, %v3006_v28  ;;  %v376_v35 = vrot.slane %v369_v33, %v2998_v20  ;;  %v358_v37 = vrot.slane %v344_v32, %v3006_v28 }
 0x1cc   : > { %737 = vrot.lane.b32.xlu1 %v307_v13, %s2767_s24  ;;  %735 = vrot.lane.b32.xlu0 %v304_v5, %s2767_s24  ;;  %v377_v38 = vcombine.low %v368_v36, %v376_v35  ;;  %v378_v39 = vcombine.high %v368_v36, %v376_v35  ;;  %v359_v41 = vcombine.high %v351_v34, %v2768_v40  ;;  %v399_v45 = vshrl.u32 %v351_v34, 16 }
 0x1cd   : > { %v360_v44 = vcombine.high %v358_v37, %v2768_v40  ;;  %v415_v51 = vshrl.u32 %v358_v37, 16 }
 0x1ce   : > { %v385_v42 = vrot.slane %v377_v38, %v3006_v28  ;;  %v392_v43 = vrot.slane %v378_v39, %v3006_v28  ;;  %v407_v50 = vshrl.u32 %v359_v41, 16 }
 0x1cf   : > { %v423_v58 = vshrl.u32 %v360_v44, 16 }
 0x1d0   : > { %739 = vrot.lane.b32.xlu1 %v310_v19, %s2767_s24  ;;  %741 = vrot.lane.b32.xlu0 %v313_v12, %s2767_s24  ;;  %v393_v46 = vcombine.high %v385_v42, %v2768_v40  ;;  %v394_v47 = vcombine.high %v392_v43, %v2768_v40  ;;  %v397_v48 = vpack.i.b16 %v385_v42, %v351_v34  ;;  %v400_v49 = vshrl.u32 %v385_v42, 16 }
 0x1d1   : > { %v413_v52 = vpack.i.b16 %v392_v43, %v358_v37  ;;  %v416_v53 = vshrl.u32 %v392_v43, 16 }
 0x1d2   : > { %v401_v54 = vpack.i.b16 %v400_v49, %v399_v45  ;;  %v405_v55 = vpack.i.b16 %v393_v46, %v359_v41  ;;  %v408_v56 = vshrl.u32 %v393_v46, 16  ;;  %v421_v57 = vpack.i.b16 %v394_v47, %v360_v44  ;;  %v520_v41 = vpop.permute.xlu1 %519 }
 0x1d3   : > { %v417_v59 = vpack.i.b16 %v416_v53, %v415_v51  ;;  %v424_v60 = vshrl.u32 %v394_v47, 16  ;;  %v427_v61 = vcombine.low %v397_v48, %v413_v52 }
 0x1d4   : > { %743 = vrot.lane.b32.xlu1 %v316_v18, %s2767_s24  ;;  %745 = vrot.lane.b32.xlu0 %v319_v24, %s2767_s24  ;;  %v409_v62 = vpack.i.b16 %v408_v56, %v407_v50  ;;  %v435_v63 = vcombine.low %v405_v55, %v421_v57 }
 0x1d5   : > { %v425_v1 = vpack.i.b16 %v424_v60, %v423_v58  ;;  %v461_v2 = vcombine.low %v401_v54, %v417_v59  ;;  %v434_v3 = vrot.slane %v427_v61, %v2998_v20 }
 0x1d6   : > { %v442_v4 = vrot.slane %v435_v63, %v2998_v20 }
 0x1d7   : > { %v469_v5 = vcombine.low %v409_v62, %v425_v1  ;;  %v468_v8 = vrot.slane %v461_v2, %v2998_v20 }
 0x1d8   : > { %v443_v6 = vcombine.low %v434_v3, %v442_v4  ;;  %v444_v7 = vcombine.high %v434_v3, %v442_v4 }
 0x1d9   : > { %v476_v9 = vrot.slane %v469_v5, %v2998_v20 }
 0x1da   : > { %v3037_v10 = vrot.slane %v443_v6, %v3006_v28  ;;  %v3040_v11 = vrot.slane %v444_v7, %v3006_v28 }
 0x1db   : > { %v477_v12 = vcombine.low %v468_v8, %v476_v9  ;;  %v478_v13 = vcombine.high %v468_v8, %v476_v9 }
 0x1dc   : > { %v3047_v15 = vcombine.high %v3037_v10, %v2768_v40  ;;  %v498_v17 = vshrl.u32 %v3037_v10, 16  ;;  %v3055_v18 = vcombine.high %v3040_v11, %v2768_v40  ;;  %v510_v25 = vshrl.u32 %v3040_v11, 16 }
 0x1dd   : > { %v3043_v14 = vrot.slane %v477_v12, %v3006_v28  ;;  %v3050_v16 = vrot.slane %v478_v13, %v3006_v28 }
 0x1de   : > { %v504_v32 = vshrl.u32 %v3047_v15, 16  ;;  %v516_v36 = vshrl.u32 %v3055_v18, 16 }
 0x1df   : > { %v497_v19 = vpack.i.b16 %v3043_v14, %v3037_v10  ;;  %v499_v21 = vshrl.u32 %v3043_v14, 16  ;;  %v3062_v22 = vcombine.high %v3043_v14, %v2768_v40  ;;  %v509_v24 = vpack.i.b16 %v3050_v16, %v3040_v11 }
 0x1e0   : > { %v511_v26 = vshrl.u32 %v3050_v16, 16  ;;  %v3070_v27 = vcombine.high %v3050_v16, %v2768_v40 }
 0x1e1   : > { %v3072_v29 = vpack.i.b16 %v499_v21, %v498_v17  ;;  %v503_v31 = vpack.i.b16 %v3062_v22, %v3047_v15  ;;  %v505_v33 = vshrl.u32 %v3062_v22, 16 }
 0x1e2   : > { %v3078_v34 = vpack.i.b16 %v511_v26, %v510_v25  ;;  %v515_v35 = vpack.i.b16 %v3070_v27, %v3055_v18  ;;  %v517_v37 = vshrl.u32 %v3070_v27, 16 }
 0x1e3   : > { %v3084_v38 = vpack.i.b16 %v505_v33, %v504_v32 }
 0x1e4   : > { %v3086_v39 = vpack.i.b16 %v517_v37, %v516_v36 }
 0x22e   : > { %v522_v42 = vpop.permute.xlu0 %521 }
 0x232   : > { %v524_v43 = vpop.permute.xlu1 %523  ;;  %v526_v44 = vpop.permute.xlu0 %525 }
 0x236   : > { %v528_v45 = vpop.permute.xlu1 %527  ;;  %v530_v46 = vpop.permute.xlu0 %529 }
 0x237   : > { %v543_v47 = vcombine.low %v520_v41, %v528_v45  ;;  %v577_v48 = vcombine.low %v522_v42, %v530_v46 }
 0x239   : > { %v550_v53 = vrot.slane %v543_v47, %v2998_v20  ;;  %v584_v54 = vrot.slane %v577_v48, %v2998_v20 }
 0x23a   : > { %v532_v49 = vpop.permute.xlu1 %531  ;;  %v534_v50 = vpop.permute.xlu0 %533 }
 0x23b   : > { %v551_v51 = vcombine.low %v524_v43, %v532_v49  ;;  %v585_v52 = vcombine.low %v526_v44, %v534_v50 }
 0x23d   : > { %v558_v55 = vrot.slane %v551_v51, %v2998_v20  ;;  %v592_v56 = vrot.slane %v585_v52, %v2998_v20 }
 0x23f   : > { %v559_v57 = vcombine.low %v550_v53, %v558_v55  ;;  %v560_v58 = vcombine.high %v550_v53, %v558_v55  ;;  %v593_v59 = vcombine.low %v584_v54, %v592_v56  ;;  %v594_v60 = vcombine.high %v584_v54, %v592_v56 }
 0x241   : > { %v567_v61 = vrot.slane %v559_v57, %v3006_v28  ;;  %v574_v62 = vrot.slane %v560_v58, %v3006_v28  ;;  %v601_v63 = vrot.slane %v593_v59, %v3006_v28  ;;  %v608_v1 = vrot.slane %v594_v60, %v3006_v28 }
 0x243   : > { %v575_v2 = vcombine.high %v567_v61, %v2768_v40  ;;  %v576_v3 = vcombine.high %v574_v62, %v2768_v40  ;;  %v615_v4 = vshrl.u32 %v567_v61, 16  ;;  %v631_v5 = vshrl.u32 %v574_v62, 16 }
 0x244   : > { %v609_v6 = vcombine.high %v601_v63, %v2768_v40  ;;  %v610_v7 = vcombine.high %v608_v1, %v2768_v40  ;;  %v613_v8 = vpack.i.b16 %v601_v63, %v567_v61  ;;  %v616_v9 = vshrl.u32 %v601_v63, 16 }
 0x245   : > { %v623_v12 = vshrl.u32 %v575_v2, 16  ;;  %v639_v13 = vshrl.u32 %v576_v3, 16  ;;  %v629_v17 = vpack.i.b16 %v608_v1, %v574_v62  ;;  %v632_v21 = vshrl.u32 %v608_v1, 16 }
 0x246   : > { %v617_v25 = vpack.i.b16 %v616_v9, %v615_v4  ;;  %v621_v26 = vpack.i.b16 %v609_v6, %v575_v2  ;;  %v624_v32 = vshrl.u32 %v609_v6, 16  ;;  %v637_v33 = vpack.i.b16 %v610_v7, %v576_v3 }
 0x247   : > { %v633_v36 = vpack.i.b16 %v632_v21, %v631_v5  ;;  %v640_v37 = vshrl.u32 %v610_v7, 16  ;;  %v643_v42 = vcombine.low %v613_v8, %v629_v17 }
 0x248   : > { %v625_v41 = vpack.i.b16 %v624_v32, %v623_v12  ;;  %v651_v43 = vcombine.low %v621_v26, %v637_v33 }
 0x249   : > { %v641_v44 = vpack.i.b16 %v640_v37, %v639_v13  ;;  %v677_v45 = vcombine.low %v617_v25, %v633_v36  ;;  %v650_v46 = vrot.slane %v643_v42, %v2998_v20 }
 0x24a   : > { %v658_v47 = vrot.slane %v651_v43, %v2998_v20 }
 0x24b   : > { %v685_v48 = vcombine.low %v625_v41, %v641_v44  ;;  %v684_v50 = vrot.slane %v677_v45, %v2998_v20 }
 0x24c   : > { %v659_v49 = vcombine.low %v650_v46, %v658_v47  ;;  %v660_v4 = vcombine.high %v650_v46, %v658_v47 }
 0x24d   : > { %v692_v51 = vrot.slane %v685_v48, %v2998_v20 }
 0x24e   : > { %v667_v52 = vrot.slane %v659_v49, %v3006_v28  ;;  %v674_v8 = vrot.slane %v660_v4, %v3006_v28  ;;  %v738_v4 = vpop.permute.xlu1 %737 }
 0x24f   : > { %v693_v53 = vcombine.low %v684_v50, %v692_v51  ;;  %v694_v1 = vcombine.high %v684_v50, %v692_v51 }
 0x250   : > { %v714_v56 = vshrl.u32 %v667_v52, 16  ;;  %v675_v61 = vcombine.high %v667_v52, %v2768_v40  ;;  %v726_v14 = vshrl.u32 %v674_v8, 16  ;;  %v676_v17 = vcombine.high %v674_v8, %v2768_v40 }
 0x251   : > { %v701_v54 = vrot.slane %v693_v53, %v3006_v28  ;;  %v708_v6 = vrot.slane %v694_v1, %v3006_v28 }
 0x252   : > { %v720_v3 = vshrl.u32 %v675_v61, 16  ;;  %v732_v22 = vshrl.u32 %v676_v17, 16 }
 0x253   : > { %v713_v55 = vpack.i.b16 %v701_v54, %v667_v52  ;;  %v715_v57 = vshrl.u32 %v701_v54, 16  ;;  %v709_v58 = vcombine.high %v701_v54, %v2768_v40  ;;  %v727_v12 = vshrl.u32 %v708_v6, 16 }
 0x254   : > { %v725_v10 = vpack.i.b16 %v708_v6, %v674_v8  ;;  %v710_v13 = vcombine.high %v708_v6, %v2768_v40  ;;  %v740_v6 = vpop.permute.xlu1 %739 }
 0x255   : > { %v956_v59 = vsel %vm951_vm2, %v713_v55, 0  ;;  %v716_v60 = vpack.i.b16 %v715_v57, %v714_v56  ;;  %v721_v63 = vshrl.u32 %v709_v58, 16  ;;  %v719_v2 = vpack.i.b16 %v709_v58, %v675_v61 }
 0x256   : > { %2363 = vmatpush3.bf16.xpose.msra.mxu1 %v956_v59  ;;  %v733_v25 = vshrl.u32 %v710_v13, 16  ;;  %v731_v15 = vpack.i.b16 %v710_v13, %v676_v17 }
 0x257   : > { %v1002_v62 = vsel %vm951_vm2, %v716_v60, 0  ;;  %2374 = vmatprep.subr.bf16.mxu1 %v2755_v0  ;;  %v722_v5 = vpack.i.b16 %v721_v63, %v720_v3  ;;  %v1048_v7 = vsel %vm951_vm2, %v719_v2, 0 }
 0x258   : > { %2369 = vmatpush3.bf16.xpose.msra.mxu0 %v1002_v62  ;;  %v744_v8 = vpop.permute.xlu1 %743 }
 0x259   : > { %2380 = vmatprep.subr.bf16.mxu0 %v2755_v0  ;;  %v1094_v9 = vsel %vm951_vm2, %v722_v5, 0  ;;  %v736_v5 = vpop.permute.xlu0 %735 }
 0x25d   : > { %2365 = vmatmul.mubr.msk.bf16.vlgmr.msra.gmra.mrb[0].mxu1 %vm951_vm2, %v497_v19  ;;  %v728_v19 = vpack.i.b16 %v727_v12, %v726_v14 }
 0x25e   : > { %2375 = vmatpush3.bf16.xpose.msra.mxu1 %v1048_v7  ;;  %2376 = vmatprep.mubr.msk.bf16.mxu1 %vm2756_vm0, %v2755_v0  ;;  %v742_v7 = vpop.permute.xlu0 %741 }
 0x25f   : > { %2371 = vmatmul.mubr.msk.bf16.vlgmr.msra.gmra.mrb[4].mxu0 %vm951_vm2, %v3072_v29  ;;  %2386 = vmatprep.subr.bf16.mxu1 %v2755_v0  ;;  %v1140_v29 = vsel %vm951_vm2, %v725_v10, 0  ;;  %v1186_v21 = vsel %vm951_vm2, %v728_v19, 0  ;;  %v759_v19 = vcombine.low %v736_v5, %v744_v8 }
 0x260   : > { %2381 = vmatpush3.bf16.xpose.msra.mxu0 %v1094_v9  ;;  %2382 = vmatprep.mubr.msk.bf16.mxu0 %vm2756_vm0, %v2755_v0 }
 0x261   : > { %2392 = vmatprep.subr.bf16.mxu0 %v2755_v0 }
 0x262   : > { %v746_v9 = vpop.permute.xlu0 %745 }
 0x265   : > { %2377 = vmatmul.mubr.msk.bf16.vlgmr.msra.gmra.mrb[4].mxu1 %vm951_vm2, %v503_v31  ;;  %v734_v31 = vpack.i.b16 %v733_v25, %v732_v22 }
 0x266   : > { %2387 = vmatpush3.bf16.xpose.msra.mxu1 %v1140_v29  ;;  %2388 = vmatprep.mubr.msk.bf16.mxu1 %vm2756_vm0, %v2755_v0 }
 0x267   : > { %2383 = vmatmul.mubr.msk.bf16.vlgmr.msra.gmra.mrb[8].mxu0 %vm951_vm2, %v3084_v38  ;;  %2398 = vmatprep.subr.bf16.mxu1 %v2755_v0  ;;  %v1232_v38 = vsel %vm951_vm2, %v731_v15, 0  ;;  %v1278_v26 = vsel %vm951_vm2, %v734_v31, 0  ;;  %v766_v31 = vrot.slane %v759_v19, %v2998_v20 }
 0x268   : > { %2393 = vmatpush3.bf16.xpose.msra.mxu0 %v1186_v21  ;;  %2394 = vmatprep.mubr.msk.bf16.mxu0 %vm2756_vm0, %v2755_v0  ;;  %v793_v21 = vcombine.low %v738_v4, %v746_v9 }
 0x269   : > { %2404 = vmatprep.subr.bf16.mxu0 %v2755_v0 }
 0x26d   : > { %2389 = vmatmul.mubr.msk.bf16.vlgmr.msra.gmra.mrb[8].mxu1 %vm951_vm2, %v509_v24 }
 0x26e   : > { %2399 = vmatpush3.bf16.xpose.msra.mxu1 %v1232_v38  ;;  %2400 = vmatprep.mubr.msk.bf16.mxu1 %vm2756_vm0, %v2755_v0 }
 0x26f   : > { %2395 = vmatmul.mubr.msk.bf16.vlgmr.msra.gmra.mrb[12].mxu0 %vm951_vm2, %v3078_v34  ;;  %2410 = vmatprep.subr.bf16.mxu1 %v2755_v0 }
 0x270   : > { %2405 = vmatpush3.bf16.xpose.msra.mxu0 %v1278_v26  ;;  %2406 = vmatprep.mubr.msk.bf16.mxu0 %vm2756_vm0, %v2755_v0 }
 0x271   : > { %2416 = vmatprep.subr.bf16.mxu0 %v2755_v0 }
 0x275   : > { %2401 = vmatmul.mubr.msk.bf16.vlgmr.msra.gmra.mrb[12].mxu1 %vm951_vm2, %v515_v35 }
 0x276   : > { %2412 = vmatprep.mubr.msk.bf16.mxu1 %vm2756_vm0, %v2755_v0 }
 0x277   : > { %2407 = vmatmul.mubr.msk.bf16.vlgmr.msra.gmra.mrb[16].mxu0 %vm951_vm2, %v3086_v39 }
 0x278   : > { %2418 = vmatprep.mubr.msk.bf16.mxu0 %vm2756_vm0, %v2755_v0 }
 0x330   : > { %v992_v11 = vpop.f32.mrb[0].mxu1 }
 0x331   : > { %v2366_v16 = vpop.f32.mrb[1].mxu1  ;;  %v1321_v24 = vsel %vm1320_vm3, %v992_v11, -inf }
 0x332   : > { %1322 = vmax.xlane.f32.xlu1 %v1321_v24  ;;  %v995_v34 = vpop.f32.mrb[2].mxu1  ;;  %v1038_v32 = vpop.f32.mrb[4].mxu0  ;;  %v800_v16 = vrot.slane %v793_v21, %v2998_v20 }
 0x333   : > { %v2367_v18 = vpop.f32.mrb[3].mxu1  ;;  %v2372_v27 = vpop.f32.mrb[5].mxu0  ;;  %v1324_v35 = vsel %vm1320_vm3, %v1038_v32, -inf }
 0x334   : > { %1325 = vmax.xlane.f32.xlu0 %v1324_v35  ;;  %v1041_v33 = vpop.f32.mrb[6].mxu0 }
 0x335   : > { %v2373_v36 = vpop.f32.mrb[7].mxu0 }
 0x338   : > { %v3170_v37 = vpop.f32.mrb[4].mxu1 }
 0x339   : > { %v2378_v39 = vpop.f32.mrb[5].mxu1 }
 0x33a   : > { %v1087_v41 = vpop.f32.mrb[6].mxu1  ;;  %v3172_v42 = vpop.f32.mrb[8].mxu0 }
 0x33b   : > { %v2379_v43 = vpop.f32.mrb[7].mxu1  ;;  %v2384_v44 = vpop.f32.mrb[9].mxu0  ;;  %v1330_v63 = vsel %vm1320_vm3, %v3172_v42, -inf }
 0x33c   : > { %v1133_v45 = vpop.f32.mrb[10].mxu0 }
 0x33d   : > { %v2385_v46 = vpop.f32.mrb[11].mxu0 }
 0x340   : > { %v3174_v47 = vpop.f32.mrb[8].mxu1 }
 0x341   : > { %v2390_v48 = vpop.f32.mrb[9].mxu1 }
 0x342   : > { %v1179_v49 = vpop.f32.mrb[10].mxu1  ;;  %v3176_v50 = vpop.f32.mrb[12].mxu0 }
 0x343   : > { %747 = vrot.lane.b32.xlu1 %v3000_v23, %s2767_s24  ;;  %v2391_v51 = vpop.f32.mrb[11].mxu1  ;;  %v2396_v52 = vpop.f32.mrb[13].mxu0  ;;  %v1327_v23 = vsel %vm1320_vm3, %v3170_v37, -inf  ;;  %v1336_v1 = vsel %vm1320_vm3, %v3176_v50, -inf }
 0x344   : > { %v1225_v53 = vpop.f32.mrb[14].mxu0 }
 0x345   : > { %v2397_v54 = vpop.f32.mrb[15].mxu0 }
 0x348   : > { %v3180_v55 = vpop.f32.mrb[12].mxu1 }
 0x349   : > { %v2402_v56 = vpop.f32.mrb[13].mxu1  ;;  %v1339_v3 = vsel %vm1320_vm3, %v3180_v55, -inf }
 0x34a   : > { %v1271_v57 = vpop.f32.mrb[14].mxu1  ;;  %749 = vrot.lane.b32.xlu0 %v3009_v30, %s2767_s24  ;;  %v3184_v58 = vpop.f32.mrb[16].mxu0  ;;  %v1333_v30 = vsel %vm1320_vm3, %v3174_v47, -inf  ;;  %s3325_s24 = scalar_lea.hbm %s3374_s4, %s2313_s30 }
 0x34b   : > { %v2403_v59 = vpop.f32.mrb[15].mxu1  ;;  %v2408_v60 = vpop.f32.mrb[17].mxu0  ;;  %v1342_v2 = vsel %vm1320_vm3, %v3184_v58, -inf }
 0x34c   : > { %v1317_v61 = vpop.f32.mrb[18].mxu0 }
 0x34d   : > { %v2409_v62 = vpop.f32.mrb[19].mxu0 }
 0x367   : > { %1328 = vmax.xlane.f32.xlu1 %v1327_v23 }
 0x369   : > { %1331 = vmax.xlane.f32.xlu0 %v1330_v63 }
 0x36b   : > { %1337 = vmax.xlane.f32.xlu1 %v1336_v1 }
 0x36d   : > { %1334 = vmax.xlane.f32.xlu0 %v1333_v30 }
 0x36f   : > { %1343 = vmax.xlane.f32.xlu1 %v1342_v2 }
 0x371   : > { %1340 = vmax.xlane.f32.xlu0 %v1339_v3 }
 0x3bf   : > { %v1323_v12 = vpop.xlane.xlu1 %1322 }
 0x3c0   : > { %v1345_v10 = vsub.f32 %v992_v11, %v1323_v12 }
 0x3c1   : > { %v1326_v14 = vpop.xlane.xlu0 %1325 }
 0x3c2   : > { %v1353_v13 = vmul.f32 1.442695, %v1345_v10  ;;  %v1346_v29 = vsub.f32 %v1038_v32, %v1326_v14 }
 0x3c3   : > { %v748_v17 = vpop.permute.xlu1 %747 }
 0x3c4   : > { %2560 = vpow2.f32 %v1353_v13  ;;  %v1355_v25 = vmul.f32 1.442695, %v1346_v29  ;;  %v767_v15 = vcombine.low %v740_v6, %v748_v17 }
 0x3c5   : > { %v750_v22 = vpop.permute.xlu0 %749 }
 0x3c6   : > { %2562 = vpow2.f32 %v1355_v25  ;;  %v774_v38 = vrot.slane %v767_v15, %v2998_v20  ;;  %v801_v26 = vcombine.low %v742_v7, %v750_v22 }
 0x3c8   : > { %v775_v24 = vcombine.low %v766_v31, %v774_v38  ;;  %v776_v11 = vcombine.high %v766_v31, %v774_v38  ;;  %v808_v34 = vrot.slane %v801_v26, %v2998_v20 }
 0x3ca   : > { %v783_v32 = vrot.slane %v775_v24, %v3006_v28  ;;  %v790_v18 = vrot.slane %v776_v11, %v3006_v28  ;;  %v809_v27 = vcombine.low %v800_v16, %v808_v34  ;;  %v810_v35 = vcombine.high %v800_v16, %v808_v34 }
 0x3cc   : > { %v791_v33 = vcombine.high %v783_v32, %v2768_v40  ;;  %v792_v36 = vcombine.high %v790_v18, %v2768_v40  ;;  %v817_v39 = vrot.slane %v809_v27, %v3006_v28  ;;  %v824_v41 = vrot.slane %v810_v35, %v3006_v28 }
 0x3cd   : > { %v831_v44 = vshrl.u32 %v783_v32, 16  ;;  %v847_v46 = vshrl.u32 %v790_v18, 16 }
 0x3ce   : > { %v2561_v43 = vpop.eup %2560  ;;  %v839_v45 = vshrl.u32 %v791_v33, 16  ;;  %v825_v48 = vcombine.high %v817_v39, %v2768_v40  ;;  %v826_v49 = vcombine.high %v824_v41, %v2768_v40  ;;  %v829_v51 = vpack.i.b16 %v817_v39, %v783_v32 }
 0x3cf   : > { %v832_v52 = vshrl.u32 %v817_v39, 16  ;;  %v855_v54 = vshrl.u32 %v792_v36, 16  ;;  %v845_v56 = vpack.i.b16 %v824_v41, %v790_v18  ;;  %v848_v57 = vshrl.u32 %v824_v41, 16 }
 0x3d0   : > { %v2563_v53 = vpop.eup %2562  ;;  %v1369_v59 = vsel %vm1320_vm3, %v2561_v43, 0.0  ;;  %v837_v61 = vpack.i.b16 %v825_v48, %v791_v33  ;;  %v840_v62 = vshrl.u32 %v825_v48, 16  ;;  %v853_v23 = vpack.i.b16 %v826_v49, %v792_v36 }
 0x3d1   : > { %v833_v60 = vpack.i.b16 %v832_v52, %v831_v44  ;;  %1370 = vadd.xlane.f32.xlu0 %v1369_v59  ;;  %v849_v63 = vpack.i.b16 %v848_v57, %v847_v46  ;;  %v856_v1 = vshrl.u32 %v826_v49, 16  ;;  %v859_v30 = vcombine.low %v829_v51, %v845_v56 }
 0x3d2   : > { %v1372_v2 = vsel %vm1320_vm3, %v2563_v53, 0.0  ;;  %v841_v3 = vpack.i.b16 %v840_v62, %v839_v45  ;;  %v867_v4 = vcombine.low %v837_v61, %v853_v23  ;;  %v1393_v34 = vpack.c.bf16 %v2561_v43, %v2561_v43 }
 0x3d3   : > { %1373 = vadd.xlane.f32.xlu1 %v1372_v2  ;;  %v857_v5 = vpack.i.b16 %v856_v1, %v855_v54  ;;  %v893_v6 = vcombine.low %v833_v60, %v849_v63  ;;  %v866_v7 = vrot.slane %v859_v30, %v2998_v20  ;;  %v1394_v27 = vpack.c.bf16 %v2563_v53, %v2563_v53 }
 0x3d4   : > { %v874_v8 = vrot.slane %v867_v4, %v2998_v20 }
 0x3d5   : > { %v901_v9 = vcombine.low %v841_v3, %v857_v5  ;;  %v900_v10 = vrot.slane %v893_v6, %v2998_v20 }
 0x3d6   : > { %v875_v12 = vcombine.low %v866_v7, %v874_v8  ;;  %v876_v51 = vcombine.high %v866_v7, %v874_v8 }
 0x3d7   : > { %v908_v14 = vrot.slane %v901_v9, %v2998_v20 }
 0x3d8   : > { %v883_v19 = vrot.slane %v875_v12, %v3006_v28  ;;  %v890_v59 = vrot.slane %v876_v51, %v3006_v28 }
 0x3d9   : > { %v909_v13 = vcombine.low %v900_v10, %v908_v14  ;;  %v910_v45 = vcombine.high %v900_v10, %v908_v14 }
 0x3da   : > { %v891_v29 = vcombine.high %v883_v19, %v2768_v40  ;;  %v930_v25 = vshrl.u32 %v883_v19, 16  ;;  %v942_v63 = vshrl.u32 %v890_v59, 16  ;;  %v892_v6 = vcombine.high %v890_v59, %v2768_v40 }
 0x3db   : > { %v917_v17 = vrot.slane %v909_v13, %v3006_v28  ;;  %v924_v56 = vrot.slane %v910_v45, %v3006_v28 }
 0x3dc   : > { %v936_v31 = vshrl.u32 %v891_v29, 16 }
 0x3dd   : > { %v929_v21 = vpack.i.b16 %v917_v17, %v883_v19  ;;  %v931_v15 = vshrl.u32 %v917_v17, 16  ;;  %v925_v22 = vcombine.high %v917_v17, %v2768_v40  ;;  %v943_v61 = vshrl.u32 %v924_v56, 16 }
 0x3de   : > { %v941_v23 = vpack.i.b16 %v924_v56, %v890_v59  ;;  %v948_v19 = vshrl.u32 %v892_v6, 16 }
 0x3df   : > { %v1406_v38 = vsel %vm1404_vm4, %v929_v21, 0  ;;  %v932_v26 = vpack.i.b16 %v931_v15, %v930_v25  ;;  %v935_v16 = vpack.i.b16 %v925_v22, %v891_v29  ;;  %v937_v24 = vshrl.u32 %v925_v22, 16 }
 0x3e0   : > { %2411 = vmatpush3.bf16.msra.mxu1 %v1406_v38  ;;  %v944_v2 = vpack.i.b16 %v943_v61, %v942_v63  ;;  %v1590_v4 = vsel %vm1404_vm4, %v941_v23, 0 }
 0x3e1   : > { %v1452_v11 = vsel %vm1404_vm4, %v932_v26, 0  ;;  %2422 = vmatprep.subr.bf16.mxu1 %v2755_v0  ;;  %v938_v32 = vpack.i.b16 %v937_v24, %v936_v31  ;;  %v1498_v18 = vsel %vm1404_vm4, %v935_v16, 0 }
 0x3e2   : > { %2417 = vmatpush3.bf16.msra.mxu0 %v1452_v11  ;;  %v1636_v8 = vsel %vm1404_vm4, %v944_v2, 0 }
 0x3e3   : > { %2413 = vmatmul.mubr.msk.bf16.vlgmr.msra.gmra.mrb[16].mxu1 %vm1320_vm3, %v1393_v34  ;;  %2428 = vmatprep.subr.bf16.mxu0 %v2755_v0  ;;  %v1544_v35 = vsel %vm1404_vm4, %v938_v32, 0 }
 0x3e4   : > { %2423 = vmatpush3.bf16.msra.mxu1 %v1498_v18  ;;  %2424 = vmatprep.mubr.msk.bf16.mxu1 %vm2756_vm0, %v2755_v0 }
 0x3e5   : > { %2419 = vmatmul.mubr.msk.bf16.vlgmr.msra.gmra.mrb[20].mxu0 %vm1320_vm3, %v1394_v27  ;;  %2434 = vmatprep.subr.bf16.mxu1 %v2755_v0 }
 0x3e6   : > { %2429 = vmatpush3.bf16.msra.mxu0 %v1544_v35  ;;  %2430 = vmatprep.mubr.msk.bf16.mxu0 %vm2756_vm0, %v2755_v0 }
 0x3e7   : > { %2440 = vmatprep.subr.bf16.mxu0 %v2755_v0 }
 0x3f4   : > { %v1329_v33 = vpop.xlane.xlu1 %1328 }
 0x3f5   : > { %v1347_v36 = vsub.f32 %v3170_v37, %v1329_v33 }
 0x3f6   : > { %v1332_v39 = vpop.xlane.xlu0 %1331 }
 0x3f7   : > { %v1357_v41 = vmul.f32 1.442695, %v1347_v36  ;;  %v1348_v43 = vsub.f32 %v3172_v42, %v1332_v39 }
 0x3f8   : > { %v1338_v44 = vpop.xlane.xlu1 %1337 }
 0x3f9   : > { %2564 = vpow2.f32 %v1357_v41  ;;  %v1359_v46 = vmul.f32 1.442695, %v1348_v43  ;;  %v1350_v48 = vsub.f32 %v3176_v50, %v1338_v44 }
 0x3fa   : > { %v1335_v49 = vpop.xlane.xlu0 %1334 }
 0x3fb   : > { %2566 = vpow2.f32 %v1359_v46  ;;  %v1363_v52 = vmul.f32 1.442695, %v1350_v48  ;;  %v1349_v53 = vsub.f32 %v3174_v47, %v1335_v49 }
 0x3fc   : > { %v1344_v54 = vpop.xlane.xlu1 %1343 }
 0x3fd   : > { %2568 = vpow2.f32 %v1363_v52  ;;  %v1361_v37 = vmul.f32 1.442695, %v1349_v53  ;;  %v1352_v57 = vsub.f32 %v3184_v58, %v1344_v54  ;;  %v926_v58 = vcombine.high %v924_v56, %v2768_v40 }
 0x3fe   : > { %v1341_v42 = vpop.xlane.xlu0 %1340 }
 0x3ff   : > { %2570 = vpow2.f32 %v1361_v37  ;;  %v1367_v60 = vmul.f32 1.442695, %v1352_v57  ;;  %v1351_v50 = vsub.f32 %v3180_v55, %v1341_v42  ;;  %v949_v9 = vshrl.u32 %v926_v58, 16 }
 0x400   : > { %v947_v40 = vpack.i.b16 %v926_v58, %v892_v6 }
 0x401   : > { %v1365_v62 = vmul.f32 1.442695, %v1351_v50  ;;  %2572 = vpow2.f32 %v1367_v60  ;;  %v950_v17 = vpack.i.b16 %v949_v9, %v948_v19 }
 0x402   : > { %v1682_v25 = vsel %vm1404_vm4, %v947_v40, 0 }
 0x403   : > { %v2565_v47 = vpop.eup %2564  ;;  %2574 = vpow2.f32 %v1365_v62  ;;  %v1728_v38 = vsel %vm1404_vm4, %v950_v17, 0 }
 0x404   : > { %v1375_v1 = vsel %vm1320_vm3, %v2565_v47, 0.0  ;;  %v1395_v30 = vpack.c.bf16 %v2565_v47, %v2565_v47 }
 0x405   : > { %v2567_v3 = vpop.eup %2566  ;;  %1376 = vadd.xlane.f32.xlu0 %v1375_v1 }
 0x406   : > { %2425 = vmatmul.mubr.msk.bf16.vlgmr.msra.gmra.mrb[20].mxu1 %vm1320_vm3, %v1395_v30  ;;  %v1378_v55 = vsel %vm1320_vm3, %v2567_v3, 0.0  ;;  %v1396_v5 = vpack.c.bf16 %v2567_v3, %v2567_v3 }
 0x407   : > { %v2569_v7 = vpop.eup %2568  ;;  %2435 = vmatpush3.bf16.msra.mxu1 %v1590_v4  ;;  %1379 = vadd.xlane.f32.xlu1 %v1378_v55 }
 0x408   : > { %2431 = vmatmul.mubr.msk.bf16.vlgmr.msra.gmra.mrb[24].mxu0 %vm1320_vm3, %v1396_v5  ;;  %2436 = vmatprep.mubr.msk.bf16.mxu1 %vm2756_vm0, %v2755_v0  ;;  %v1384_v14 = vsel %vm1320_vm3, %v2569_v7, 0.0  ;;  %v1398_v22 = vpack.c.bf16 %v2569_v7, %v2569_v7 }
 0x409   : > { %v2571_v12 = vpop.eup %2570  ;;  %2441 = vmatpush3.bf16.msra.mxu0 %v1636_v8  ;;  %2446 = vmatprep.subr.bf16.mxu1 %v2755_v0 }
 0x40a   : > { %v1381_v10 = vsel %vm1320_vm3, %v2571_v12, 0.0  ;;  %2442 = vmatprep.mubr.msk.bf16.mxu0 %vm2756_vm0, %v2755_v0  ;;  %2452 = vmatprep.subr.bf16.mxu0 %v2755_v0  ;;  %v1397_v29 = vpack.c.bf16 %v2571_v12, %v2571_v12 }
 0x40b   : > { %1382 = vadd.xlane.f32.xlu0 %v1381_v10  ;;  %1385 = vadd.xlane.f32.xlu1 %v1384_v14  ;;  %v2573_v13 = vpop.eup %2572 }
 0x40c   : > { %v1390_v31 = vsel %vm1320_vm3, %v2573_v13, 0.0  ;;  %v1400_v16 = vpack.c.bf16 %v2573_v13, %v2573_v13 }
 0x40d   : > { %v2575_v21 = vpop.eup %2574 }
 0x40e   : > { %2437 = vmatmul.mubr.msk.bf16.vlgmr.msra.gmra.mrb[24].mxu1 %vm1320_vm3, %v1397_v29  ;;  %v1387_v15 = vsel %vm1320_vm3, %v2575_v21, 0.0  ;;  %v1399_v26 = vpack.c.bf16 %v2575_v21, %v2575_v21 }
 0x40f   : > { %2447 = vmatpush3.bf16.msra.mxu1 %v1682_v25  ;;  %1388 = vadd.xlane.f32.xlu0 %v1387_v15 }
 0x410   : > { %1391 = vadd.xlane.f32.xlu1 %v1390_v31  ;;  %2443 = vmatmul.mubr.msk.bf16.vlgmr.msra.gmra.mrb[28].mxu0 %vm1320_vm3, %v1398_v22 }
 0x411   : > { %2453 = vmatpush3.bf16.msra.mxu0 %v1728_v38  ;;  %2448 = vmatprep.mubr.msk.bf16.mxu1 %vm2756_vm0, %v2755_v0 }
 0x412   : > { %2454 = vmatprep.mubr.msk.bf16.mxu0 %vm2756_vm0, %v2755_v0  ;;  %2458 = vmatprep.subr.bf16.mxu1 %v2755_v0 }
 0x416   : > { %2449 = vmatmul.mubr.msk.bf16.vlgmr.msra.gmra.mrb[28].mxu1 %vm1320_vm3, %v1399_v26 }
 0x417   : > { %2462 = vmatprep.mubr.msk.bf16.mxu1 %vm2756_vm0, %v2755_v0 }
 0x418   : > { %2455 = vmatmul.mubr.msk.bf16.vlgmr.msra.gmra.mrb[32].mxu0 %vm1320_vm3, %v1400_v16 }
 0x45e   : > { %v1371_v36 = vpop.xlane.xlu0 %1370 }
 0x45f   : > { %2576 = vrcp.f32 %v1371_v36 }
 0x460   : > { %v1374_v39 = vpop.xlane.xlu1 %1373 }
 0x469   : > { %v2577_v45 = vpop.eup %2576 }
 0x492   : > { %v1377_v41 = vpop.xlane.xlu0 %1376 }
 0x493   : > { %2578 = vrcp.f32 %v1377_v41 }
 0x494   : > { %v1380_v43 = vpop.xlane.xlu1 %1379  ;;  %2580 = vrcp.f32 %v1374_v39 }
 0x495   : > { %2582 = vrcp.f32 %v1380_v43 }
 0x498   : > { %v1383_v44 = vpop.xlane.xlu0 %1382  ;;  %v1386_v46 = vpop.xlane.xlu1 %1385 }
 0x499   : > { %2584 = vrcp.f32 %v1383_v44 }
 0x49a   : > { %2586 = vrcp.f32 %v1386_v46 }
 0x49c   : > { %v1389_v52 = vpop.xlane.xlu0 %1388 }
 0x49d   : > { %v2579_v48 = vpop.eup %2578  ;;  %v1392_v47 = vpop.xlane.xlu1 %1391  ;;  %2588 = vrcp.f32 %v1389_v52 }
 0x49e   : > { %v2581_v51 = vpop.eup %2580  ;;  %2590 = vrcp.f32 %v1392_v47 }
 0x49f   : > { %v2583_v37 = vpop.eup %2582 }
 0x4a3   : > { %v2585_v16 = vpop.eup %2584 }
 0x4b6   : > { %v1442_v24 = vpop.f32.mrb[16].mxu1 }
 0x4b7   : > { %v2414_v11 = vpop.f32.mrb[17].mxu1  ;;  %v1778_v53 = vmul.f32 %v2577_v45, %v1442_v24  ;;  %v2587_v24 = vpop.eup %2586 }
 0x4b8   : > { %v1445_v34 = vpop.f32.mrb[18].mxu1  ;;  %v1488_v32 = vpop.f32.mrb[20].mxu0 }
 0x4b9   : > { %v2415_v18 = vpop.f32.mrb[19].mxu1  ;;  %v2420_v27 = vpop.f32.mrb[21].mxu0  ;;  %v1779_v59 = vmul.f32 %v2581_v51, %v1488_v32 }
 0x4ba   : > { %v1491_v35 = vpop.f32.mrb[22].mxu0  ;;  %v2589_v27 = vpop.eup %2588 }
 0x4bb   : > { %v2421_v33 = vpop.f32.mrb[23].mxu0  ;;  %v2591_v45 = vpop.eup %2590 }
 0x4d9   : > { %v1534_v49 = vpop.f32.mrb[20].mxu1 }
 0x4da   : > { %v1780_v54 = vmul.f32 %v2579_v48, %v1534_v49  ;;  %v2426_v56 = vpop.f32.mrb[21].mxu1 }
 0x4db   : > { %v1537_v57 = vpop.f32.mrb[22].mxu1  ;;  %v1580_v42 = vpop.f32.mrb[24].mxu0 }
 0x4dc   : > { %v1786_v60 = vcombine.low %v1778_v53, %v1780_v54  ;;  %v1787_v50 = vcombine.high %v1778_v53, %v1780_v54  ;;  %v1781_v61 = vmul.f32 %v2583_v37, %v1580_v42  ;;  %v2427_v62 = vpop.f32.mrb[23].mxu1  ;;  %v2432_v23 = vpop.f32.mrb[25].mxu0 }
 0x4dd   : > { %v1583_v63 = vpop.f32.mrb[26].mxu0 }
 0x4de   : > { %v1802_v1 = vcombine.low %v1779_v59, %v1781_v61  ;;  %v1803_v30 = vcombine.high %v1779_v59, %v1781_v61  ;;  %v2433_v2 = vpop.f32.mrb[27].mxu0  ;;  %v1794_v58 = vrot.slane %v1786_v60, %v2998_v20  ;;  %v1801_v3 = vrot.slane %v1787_v50, %v2998_v20 }
 0x4e0   : > { %v1810_v4 = vrot.slane %v1802_v1, %v2998_v20  ;;  %v1817_v55 = vrot.slane %v1803_v30, %v2998_v20 }
 0x4e1   : > { %v1626_v5 = vpop.f32.mrb[24].mxu1 }
 0x4e2   : > { %v1850_v6 = vcombine.low %v1794_v58, %v1810_v4  ;;  %v1851_v7 = vcombine.high %v1794_v58, %v1810_v4  ;;  %v1866_v8 = vcombine.low %v1801_v3, %v1817_v55  ;;  %v1867_v9 = vcombine.high %v1801_v3, %v1817_v55  ;;  %v2438_v12 = vpop.f32.mrb[25].mxu1 }
 0x4e3   : > { %v1629_v10 = vpop.f32.mrb[26].mxu1  ;;  %v1672_v14 = vpop.f32.mrb[28].mxu0  ;;  %v1782_v35 = vmul.f32 %v2585_v16, %v1626_v5 }
 0x4e4   : > { %v1858_v40 = vrot.slane %v1850_v6, %v3006_v28  ;;  %v1865_v19 = vrot.slane %v1851_v7, %v3006_v28  ;;  %v1874_v13 = vrot.slane %v1866_v8, %v3006_v28  ;;  %v1881_v29 = vrot.slane %v1867_v9, %v3006_v28  ;;  %v2439_v17 = vpop.f32.mrb[27].mxu1  ;;  %v2444_v21 = vpop.f32.mrb[29].mxu0  ;;  %v2558_v8 = vld [vmem:[#allocation7] sm:$0xff]  }
 0x4e5   : > { %v1675_v25 = vpop.f32.mrb[30].mxu0  ;;  %v1783_v46 = vmul.f32 %v2587_v24, %v1672_v14  ;;  %2459 = vmatpush3.bf16.msra.mxu1 %v2558_v8 }
 0x4e6   : > { %v2300_v15 = vcombine.low %v1858_v40, %v1865_v19  ;;  %v2302_v22 = vcombine.high %v1858_v40, %v1865_v19  ;;  %v2304_v31 = vcombine.low %v1874_v13, %v1881_v29  ;;  %v2306_v38 = vcombine.high %v1874_v13, %v1881_v29  ;;  %v2445_v26 = vpop.f32.mrb[31].mxu0  ;;  %2460 = vmatprep.subr.bf16.mxu1 %v2755_v0 }
 0x4e8   : > { %v1930_v11 = vrot.slane %v2300_v15, %v2998_v20  ;;  %v1946_v34 = vrot.slane %v2302_v22, %v2998_v20  ;;  %v1962_v32 = vrot.slane %v2304_v31, %v2998_v20  ;;  %v1978_v18 = vrot.slane %v2306_v38, %v2998_v20  ;;  %v2559_v22 = vld [vmem:[#allocation7 + $0x8] sm:$0xff]  }
 0x4e9   : > { %v1718_v33 = vpop.f32.mrb[28].mxu1  ;;  %2461 = vmatpush3.bf16.msra.mxu1 %v2559_v22 }
 0x4ea   : > { %v1784_v36 = vmul.f32 %v2589_v27, %v1718_v33  ;;  %v2450_v39 = vpop.f32.mrb[29].mxu1  ;;  %v1987_v41 = vcombine.high %v1930_v11, %v1946_v34  ;;  %v2019_v43 = vcombine.high %v1962_v32, %v1978_v18  ;;  %v1986_v44 = vcombine.low %v1930_v11, %v1946_v34 }
 0x4eb   : > { %v1721_v48 = vpop.f32.mrb[30].mxu1  ;;  %v1764_v49 = vpop.f32.mrb[32].mxu0  ;;  %v2018_v51 = vcombine.low %v1962_v32, %v1978_v18 }
 0x4ec   : > { %v1818_v52 = vcombine.low %v1782_v35, %v1784_v36  ;;  %v1819_v53 = vcombine.high %v1782_v35, %v1784_v36  ;;  %v1785_v54 = vmul.f32 %v2591_v45, %v1764_v49  ;;  %v2451_v56 = vpop.f32.mrb[31].mxu1  ;;  %v2456_v37 = vpop.f32.mrb[33].mxu0  ;;  %v2001_v57 = vrot.slane %v1987_v41, %v3006_v28 }
 0x4ed   : > { %v1767_v42 = vpop.f32.mrb[34].mxu0  ;;  %v2033_v59 = vrot.slane %v2019_v43, %v3006_v28  ;;  %v3288_v60 = vrot.slane %v1986_v44, %v3006_v28  ;;  %v3291_v50 = vrot.slane %v2018_v51, %v3006_v28 }
 0x4ee   : > { %v1834_v61 = vcombine.low %v1783_v46, %v1785_v54  ;;  %v1835_v62 = vcombine.high %v1783_v46, %v1785_v54  ;;  %v2457_v23 = vpop.f32.mrb[35].mxu0  ;;  %v1826_v2 = vrot.slane %v1818_v52, %v2998_v20  ;;  %v1833_v58 = vrot.slane %v1819_v53, %v2998_v20  ;;  %v2308_v54 = vld [vmem:[%s3373_s3] ss:$0 sm:$0xff] }
 0x4ef   : > { %v2052_v63 = vcombine.low %v2001_v57, %v2033_v59  ;;  %v2051_v47 = vcombine.high %v3288_v60, %v3291_v50  ;;  %v2053_v1 = vcombine.high %v2001_v57, %v2033_v59  ;;  %v2050_v30 = vcombine.low %v3288_v60, %v3291_v50 }
 0x4f0   : > { %v1842_v3 = vrot.slane %v1834_v61, %v2998_v20  ;;  %v1849_v4 = vrot.slane %v1835_v62, %v2998_v20 }
 0x4f1   : > { %2063 = vrot.lane.b32.xlu1 %v2052_v63, %s2769_s20  ;;  %2059 = vrot.lane.b32.xlu0 %v2051_v47, %s2770_s28  ;;  %s2678_s20 = scalar_lea.vmem %s3327_s6, 128  ;;  %s2776_s28 = smov [#allocation8]  }
 0x4f2   : > { %v1882_v55 = vcombine.low %v1826_v2, %v1842_v3  ;;  %v1883_v5 = vcombine.high %v1826_v2, %v1842_v3  ;;  %v1898_v6 = vcombine.low %v1833_v58, %v1849_v4  ;;  %v1899_v7 = vcombine.high %v1833_v58, %v1849_v4  ;;  %p2679_p8 = scmp.ne.s32.totalorder %s3327_s6, %s2678_s20 }
 0x4f4   : > { %v1890_v9 = vrot.slane %v1882_v55, %v3006_v28  ;;  %v1897_v12 = vrot.slane %v1883_v5, %v3006_v28  ;;  %v1906_v10 = vrot.slane %v1898_v6, %v3006_v28  ;;  %v1913_v14 = vrot.slane %v1899_v7, %v3006_v28  ;;  %p2680_p1 = pnand %p2679_p8, %p3388_p0 }
 0x4f5   : > { %2067 = vrot.lane.b32.xlu1 %v2053_v1, %s2771_s11  ;;  %s2682_s11 = sshll.u32 %s2776_s28, 4  ;;  %s2683_s11 = int_to_ptr.vmem [resolvable:$false] %s2682_s11 }
 0x4f6   : > { %v2301_v40 = vcombine.low %v1890_v9, %v1897_v12  ;;  %v2303_v19 = vcombine.high %v1890_v9, %v1897_v12  ;;  %v2305_v13 = vcombine.low %v1906_v10, %v1913_v14  ;;  %v2307_v29 = vcombine.high %v1906_v10, %v1913_v14  ;;  %p2681_p3 = pneg %p2680_p1  ;;  %p2685_p7 = scmp.lt.s32.totalorder %s3327_s6, %s2683_s11 }
 0x4f8   : > { %v1937_v17 = vrot.slane %v2301_v40, %v2998_v20  ;;  %v1953_v21 = vrot.slane %v2303_v19, %v2998_v20  ;;  %v1969_v25 = vrot.slane %v2305_v13, %v2998_v20  ;;  %v1985_v15 = vrot.slane %v2307_v29, %v2998_v20 }
 0x4fa   : > { %v2002_v31 = vcombine.low %v1937_v17, %v1953_v21  ;;  %v2034_v38 = vcombine.low %v1969_v25, %v1985_v15  ;;  %v2003_v26 = vcombine.high %v1937_v17, %v1953_v21  ;;  %v2035_v16 = vcombine.high %v1969_v25, %v1985_v15 }
 0x4fc   : > { %v2010_v24 = vrot.slane %v2002_v31, %v3006_v28  ;;  %v2042_v11 = vrot.slane %v2034_v38, %v3006_v28  ;;  %v2017_v0 = vrot.slane %v2003_v26, %v3006_v28  ;;  %v2049_v34 = vrot.slane %v2035_v16, %v3006_v28 }
 0x4fe   : > { %v2055_v32 = vcombine.high %v2010_v24, %v2042_v11  ;;  %v2054_v18 = vcombine.low %v2010_v24, %v2042_v11  ;;  %v2057_v27 = vcombine.high %v2017_v0, %v2049_v34  ;;  %v2056_v35 = vcombine.low %v2017_v0, %v2049_v34 }
 0x500   : > { %2075 = vrot.lane.b32.xlu1 %v2055_v32, %s2772_s12  ;;  %2071 = vrot.lane.b32.xlu0 %v2054_v18, %s2773_s25  ;;  %s2684_s12 = scalar_lea.vmem %s2683_s11, 256 }
 0x501   : > { %p2686_p9 = scmp.lt.s32.totalorder %s2684_s12, %s2678_s20 }
 0x503   : > { %p2687_p12 = por %p2686_p9, %p2685_p7 }
 0x504   : > { %2083 = vrot.lane.b32.xlu1 %v2057_v27, %s2774_s7  ;;  %2079 = vrot.lane.b32.xlu0 %v2056_v35, %s2775_s8 }
 0x505   : > { %p2688_p2 = pnand %p2687_p12, %p2681_p3 }
 0x563   : > { %v2064_v20 = vpop.permute.xlu1 %2063  ;;  %v2060_v33 = vpop.permute.xlu0 %2059 }
 0x564   : > { %v2086_v36 = vsel %vm951_vm2, %v2050_v30, %v2060_v33 }
 0x565   : > { %v2087_v28 = vsel %vm1320_vm3, %v2086_v36, %v2064_v20 }
 0x567   : > { %v2068_v39 = vpop.permute.xlu1 %2067 }
 0x568   : > { %v2089_v41 = vsel %vm2088_vm5, %v2087_v28, %v2068_v39 }
 0x572   : > { %v2076_v43 = vpop.permute.xlu1 %2075  ;;  %v2072_v44 = vpop.permute.xlu0 %2071 }
 0x573   : > { %v2091_v45 = vsel %vm2090_vm6, %v2089_v41, %v2072_v44 }
 0x574   : > { %v2093_v48 = vsel %vm2092_vm7, %v2091_v45, %v2076_v43 }
 0x576   : > { %v2084_v46 = vpop.permute.xlu1 %2083  ;;  %v2080_v49 = vpop.permute.xlu0 %2079 }
 0x577   : > { %v2095_v51 = vsel %vm2094_vm8, %v2093_v48, %v2080_v49 }
 0x578   : > { %v2097_v52 = vsel %vm2096_vm9, %v2095_v51, %v2084_v46 }
 0x579   : > { %v2098_v53 = vpack.c.bf16 %v2097_v52, %v2097_v52 }
 0x57b   : > { %2463 = vmatmul.mubr.msk.bf16.vlgmr.msra.gmra.mrb[32].mxu1 %vm260_vm1, %v2098_v53 }
 0x64e   : > { %v2159_v56 = vpop.f32.mrb[32].mxu1 }
 0x64f   : > { %v2160_v37 = vadd.f32 %v2308_v54, %v2159_v56  ;;  %v2464_v57 = vpop.f32.mrb[33].mxu1 }
 0x650   : > { %v2162_v42 = vpop.f32.mrb[34].mxu1 }
 0x651   : > { %v2465_v59 = vpop.f32.mrb[35].mxu1  ;;  %2165 = vst.msk [vmem:[%s241_s5] sm:$0xff] %vm260_vm1, %v2160_v37 }
 0x652   : > { %2691 = shalt.err (!%p2688_p2)
}
 0x653   : > { %s2692_s29 = scalar_lea.hbm %s3325_s24, 128  ;;  %s2696_s8 = scalar_lea.hbm %s3374_s4, 256 }
 0x654   : > { %p2693_p13 = scmp.ne.s32.totalorder %s3325_s24, %s2692_s29  ;;  %p2697_p4 = scmp.lt.u32.totalorder %s3325_s24, %s3374_s4 }
 0x655   : > { %p2698_p5 = scmp.lt.u32.totalorder %s2696_s8, %s2692_s29  ;;  %p2700_p8 = scmp.lt.u32.totalorder %s2692_s29, %s3325_s24 }
 0x656   : > { %p2694_p6 = pnand %p2693_p13, %p3388_p0 }
 0x657   : > { %p2699_p11 = por %p2698_p5, %p2697_p4 }
 0x658   : > { %p2695_p10 = pneg %p2694_p6 }
 0x659   : > { %p2701_p1 = por %p2700_p8, %p2699_p11 }
 0x65b   : > { %p2702_p3 = pnand %p2701_p1, %p2695_p10 }
 0x65d   : > { %2705 = shalt.err (!%p2702_p3)
}
 0x65e   : > { %2476 = dma.vmem_to_hbm [thread:$0]  (%p3388_p0), %s3327_s6, 128, %s3325_s24, %s2167_s19  }
 0x65f PF: > { %s2192_s27 = sand.u32 1, %s2736_s15   ;;  %p3389_p7 = scmp.ne.s32.totalorder %s3379_s22, 0 }
 0x660   : > { %p3390_p9 = scmp.ge.s32.totalorder %s2748_s18, 2  ;;  %s2193_s30 = scalar_lea.sflag [#allocation4], %s2192_s27 }
 0x662   : > { %p2490_p12 = pnand %p3390_p9, %p3389_p7 }
 0x664   : > { %2731 = dma.done.wait (!%p2490_p12), %s2193_s30, 128  }
 0x665   : > { %2733 = vsyncadd (!%p2490_p12), %s2193_s30, 4294967168  ;;  %p18_p2 = scmp.ge.s32.totalorder %s2912_s9, 4   ;;  %s3391_s15 = smov %s2740_s16 }
 0x666   : > { %s3392_s16 = smov %s2744_s17  ;;  %s3393_s17 = smov %s2928_s14 }
 0x667   : > { %s3394_s18 = smov %s2912_s9  ;;  %20 = sbr.rel (!%p18_p2) target bundleno = 6 (0x6), region = 89 }
 0x66e   :  { %2198 = vsyncpa [#allocation3], 1 }
 0x66f   :  { %2200 = vsyncpa [#allocation3 + $0x1], 1 }
 0x670   :  { %2201 = vsyncpa [#allocation6], 1 }
 0x671   :  { %2202 = vsyncpa [#allocation4], 1 }
 0x672   :  { %2204 = vsyncpa [#allocation4 + $0x1], 1 }

</bundles_post_ra>
